<compile_context>
chip_gen: v5e
topology: v5e:2x2
jax: 0.10.0
libtpu: 0.0.40
codegen_flags: <defaults>
</compile_context>

<pallas_src>
import jax
import jax.numpy as jnp
import numpy as np
from jax.experimental import pallas as pl
from jax.experimental.pallas import tpu as pltpu

# ---- small deterministic config ----
BATCH = 2              # config.batch_size
NODE_NUM = 4           # config.node_num
NODE_IN_FTS = 8        # config.node_in_fts
NODE_OUT_FTS = 16      # config.node_out_fts
SEQ_LEN = 8            # config.sequence_length
GRU_HIDDEN = 8         # config.gru_hidden
HORIZON = 4            # config.horizon
EDGE_NUM = 6

OUT_FEATURES = NODE_OUT_FTS
D_IN = NODE_NUM * OUT_FEATURES      # GRU input size  = node_num * out_features = 64
HID = GRU_HIDDEN * HORIZON          # GRU hidden size = gru_hidden * horizon    = 32
ROWS = BATCH * SEQ_LEN              # 16 "virtual batch rows" after torch .view interleave


# ------------------------- fused Generator kernel -------------------------
def _generator_kernel(x_ref, p_ref, wg_ref, bg_ref,
                      wir_ref, wiz_ref, win_ref,
                      whr_ref, whz_ref, whn_ref,
                      bir_ref, biz_ref, bin_ref,
                      bhr_ref, bhz_ref, bhn_ref,
                      o_ref):
    f32 = jnp.float32

    # (1) time-major row permutation folded into an MXU op: rows (b,s) -> (s,b).
    x_tm = jnp.dot(p_ref[...], x_ref[...], preferred_element_type=f32)      # (S*B, N*F_in)

    # (2) GNN stand-in for all timesteps in ONE matmul. wg is block-diagonal
    #     (kron(I_N, W_gnn)), so each node only sees its own weights and the
    #     result is already the lane-dense (S*B, N*F_out) GRU input.
    y = jnp.dot(x_tm, wg_ref[...], preferred_element_type=f32) + bg_ref[...]
    seq = jnp.where(y > 0, y, 0.2 * y)                                       # LeakyReLU(0.2)

    # (3) hoisted GRU input projection: one matmul per gate for the whole
    #     sequence, outside the serial recurrence (per-gate -> lane-aligned).
    gxr = jnp.dot(seq, wir_ref[...], preferred_element_type=f32) + bir_ref[...]   # (S*B, HID)
    gxz = jnp.dot(seq, wiz_ref[...], preferred_element_type=f32) + biz_ref[...]
    gxn = jnp.dot(seq, win_ref[...], preferred_element_type=f32) + bin_ref[...]

    whr = whr_ref[...]
    whz = whz_ref[...]
    whn = whn_ref[...]
    bhr = bhr_ref[...]
    bhz = bhz_ref[...]
    bhn = bhn_ref[...]

    # (4) fully-unrolled in-kernel time loop (SEQ_LEN is compile-time constant):
    #     only the recurrent (B,HID)x(HID,HID) dots + gate elementwise remain
    #     on the serial critical path. No grid steps, no dynamic slicing.
    h = jnp.zeros((BATCH, HID), f32)
    for s in range(SEQ_LEN):
        lo = s * BATCH                      # contiguous rows (s, b=0..B-1), static slice
        ghr = jnp.dot(h, whr, preferred_element_type=f32) + bhr
        ghz = jnp.dot(h, whz, preferred_element_type=f32) + bhz
        ghn = jnp.dot(h, whn, preferred_element_type=f32) + bhn
        r = jax.nn.sigmoid(gxr[lo:lo + BATCH, :] + ghr)
        z = jax.nn.sigmoid(gxz[lo:lo + BATCH, :] + ghz)
        n = jnp.tanh(gxn[lo:lo + BATCH, :] + r * ghn)
        h = (1.0 - z) * n + z * h

    # (5) output_activation fused with the final hidden state.
    o_ref[...] = jnp.tanh(h)


def _full_spec(shape):
    zeros = (0,) * len(shape)
    return pl.BlockSpec(shape, lambda i: zeros)


def generator_forward(kparams, edges, node_fts, edge_fts, graph_fts):
    del edges, edge_fts, graph_fts  # unused by the GNN stand-in (see TODO above)

    # torch: stack_t GNN(node_fts[:,:,t]) then .view(-1, S, N*F_out).
    # Row-major identity: row r = b*S + s of the (B*S, N*F_in) matrix below
    # holds exactly the node inputs whose GNN outputs feed GRU step (b, s).
    x = jnp.transpose(node_fts[:, :, :SEQ_LEN], (2, 0, 1))       # (S, B*N, F_in)  one tiny copy
    x = x.reshape(ROWS, NODE_NUM * NODE_IN_FTS)                  # (16, 32)        free reshape

    args = (x, kparams["perm"], kparams["w_blk"], kparams["b_blk"],
            kparams["w_ih_r"], kparams["w_ih_z"], kparams["w_ih_n"],
            kparams["w_hh_r"], kparams["w_hh_z"], kparams["w_hh_n"],
            kparams["b_ih_r"], kparams["b_ih_z"], kparams["b_ih_n"],
            kparams["b_hh_r"], kparams["b_hh_z"], kparams["b_hh_n"])

    return pl.pallas_call(
        _generator_kernel,
        out_shape=jax.ShapeDtypeStruct((BATCH, HID), jnp.float32),
        grid=(1,),
        in_specs=[_full_spec(a.shape) for a in args],
        out_specs=_full_spec((BATCH, HID)),
        compiler_params=pltpu.CompilerParams(dimension_semantics=("arbitrary",)),
    )(*args)


# ------------------------- parameter preparation ---------------------------
def prepare_kernel_params(params):
    """One-time re-layout of canonical params into kernel-friendly layout:
    block-diagonal GNN weight, tiled GNN bias, per-gate GRU weights/biases,
    and the batch-major -> time-major row permutation matrix."""
    w_blk = jnp.kron(jnp.eye(NODE_NUM, dtype=jnp.float32), params["w_gnn"])   # (N*F_in, N*F_out)
    b_blk = jnp.tile(params["b_gnn"], (1, NODE_NUM))                          # (1, N*F_out)

    perm = np.zeros((ROWS, ROWS), np.float32)
    for s in range(SEQ_LEN):
        for b in range(BATCH):
            perm[s * BATCH + b, b * SEQ_LEN + s] = 1.0     # time-major row <- batch-major row

    kp = {"perm": jnp.asarray(perm), "w_blk": w_blk, "b_blk": b_blk}
    for i, g in enumerate(("r", "z", "n")):                # PyTorch GRU gate order [r|z|n]
        sl = slice(i * HID, (i + 1) * HID)
        kp[f"w_ih_{g}"] = params["w_ih_t"][:, sl]          # (D_IN, HID)
        kp[f"w_hh_{g}"] = params["w_hh_t"][:, sl]          # (HID, HID)
        kp[f"b_ih_{g}"] = params["b_ih"][:, sl]            # (1, HID)
        kp[f"b_hh_{g}"] = params["b_hh"][:, sl]            # (1, HID)
    return kp


# ------------------------- pure-JAX reference -----------------------------
def reference_forward(params, node_fts):
    x = jnp.transpose(node_fts[:, :, :SEQ_LEN], (2, 0, 1)).reshape(-1, NODE_IN_FTS)
    y = x @ params["w_gnn"] + params["b_gnn"]
    g = jnp.where(y > 0, y, 0.2 * y)
    seq = g.reshape(-1, SEQ_LEN, NODE_NUM * OUT_FEATURES)             # (B, S, D) torch .view semantics
    h = jnp.zeros((BATCH, HID), jnp.float32)
    for t in range(SEQ_LEN):
        xt = seq[:, t, :]
        gx = xt @ params["w_ih_t"] + params["b_ih"]
        gh = h @ params["w_hh_t"] + params["b_hh"]
        r = jax.nn.sigmoid(gx[:, :HID] + gh[:, :HID])
        z = jax.nn.sigmoid(gx[:, HID:2 * HID] + gh[:, HID:2 * HID])
        n = jnp.tanh(gx[:, 2 * HID:] + r * gh[:, 2 * HID:])
        h = (1.0 - z) * n + z * h
    return jnp.tanh(h)


# ------------------------- params & main ----------------------------------
def init_params(key):
    ks = jax.random.split(key, 6)
    s_gnn = 1.0 / np.sqrt(NODE_IN_FTS)
    s_ih = 1.0 / np.sqrt(D_IN)
    s_hh = 1.0 / np.sqrt(HID)
    return {
        "w_gnn": jax.random.uniform(ks[0], (NODE_IN_FTS, OUT_FEATURES), jnp.float32, -s_gnn, s_gnn),
        "b_gnn": jax.random.uniform(ks[1], (1, OUT_FEATURES), jnp.float32, -s_gnn, s_gnn),
        # stored transposed (in_dim, 3H) so kernels do x @ W; columns = [r | z | n]
        "w_ih_t": jax.random.uniform(ks[2], (D_IN, 3 * HID), jnp.float32, -s_ih, s_ih),
        "w_hh_t": jax.random.uniform(ks[3], (HID, 3 * HID), jnp.float32, -s_hh, s_hh),
        "b_ih": jax.random.uniform(ks[4], (1, 3 * HID), jnp.float32, -s_hh, s_hh),
        "b_hh": jax.random.uniform(ks[5], (1, 3 * HID), jnp.float32, -s_hh, s_hh),
    }


if __name__ == "__main__":
    key = jax.random.PRNGKey(0)
    kp_key, k1, k2, k3, k4 = jax.random.split(key, 5)
    params = init_params(kp_key)
    kparams = prepare_kernel_params(params)

    edges = jax.random.randint(k1, (2, BATCH * SEQ_LEN * EDGE_NUM), 0, NODE_NUM, jnp.int32)
    node_fts = jax.random.normal(k2, (BATCH * NODE_NUM, NODE_IN_FTS, SEQ_LEN), jnp.float32)
    edge_fts = jax.random.normal(k3, (EDGE_NUM,), jnp.float32)
    graph_fts = jax.random.normal(k4, (BATCH * SEQ_LEN, 4), jnp.float32)

    fwd = jax.jit(generator_forward)
    out = fwd(kparams, edges, node_fts, edge_fts, graph_fts)
    out = jax.block_until_ready(out)

    ref = reference_forward(params, node_fts)
    np.testing.assert_allclose(np.asarray(out), np.asarray(ref), rtol=1e-4, atol=1e-5)

    assert out.shape == (BATCH, GRU_HIDDEN * HORIZON)
    print("KERNEL_OK")
</pallas_src>

<mosaic_0001>
module attributes {stable_mosaic.version = 11 : i64} {
  func.func @_generator_kernel(%arg0: i32, %arg1: memref<16x32xf32, #tpu.memory_space<vmem>>, %arg2: memref<16x16xf32, #tpu.memory_space<vmem>>, %arg3: memref<32x64xf32, #tpu.memory_space<vmem>>, %arg4: memref<1x64xf32, #tpu.memory_space<vmem>>, %arg5: memref<64x32xf32, #tpu.memory_space<vmem>>, %arg6: memref<64x32xf32, #tpu.memory_space<vmem>>, %arg7: memref<64x32xf32, #tpu.memory_space<vmem>>, %arg8: memref<32x32xf32, #tpu.memory_space<vmem>>, %arg9: memref<32x32xf32, #tpu.memory_space<vmem>>, %arg10: memref<32x32xf32, #tpu.memory_space<vmem>>, %arg11: memref<1x32xf32, #tpu.memory_space<vmem>>, %arg12: memref<1x32xf32, #tpu.memory_space<vmem>>, %arg13: memref<1x32xf32, #tpu.memory_space<vmem>>, %arg14: memref<1x32xf32, #tpu.memory_space<vmem>>, %arg15: memref<1x32xf32, #tpu.memory_space<vmem>>, %arg16: memref<1x32xf32, #tpu.memory_space<vmem>>, %arg17: memref<2x32xf32, #tpu.memory_space<vmem>>) attributes {dimension_semantics = [#tpu.dimension_semantics<arbitrary>], iteration_bounds = array<i64: 1>, scalar_prefetch = 0 : i64, scratch_operands = 0 : i64, tpu.core_type = #tpu.core_type<tc>, window_params = [{pipeline_mode = #tpu.pipeline_mode<synchronous>, transform_indices = @transform_0, window_bounds = array<i64: 16, 32>}, {pipeline_mode = #tpu.pipeline_mode<synchronous>, transform_indices = @transform_1, window_bounds = array<i64: 16, 16>}, {pipeline_mode = #tpu.pipeline_mode<synchronous>, transform_indices = @transform_2, window_bounds = array<i64: 32, 64>}, {pipeline_mode = #tpu.pipeline_mode<synchronous>, transform_indices = @transform_3, window_bounds = array<i64: 1, 64>}, {pipeline_mode = #tpu.pipeline_mode<synchronous>, transform_indices = @transform_4, window_bounds = array<i64: 64, 32>}, {pipeline_mode = #tpu.pipeline_mode<synchronous>, transform_indices = @transform_5, window_bounds = array<i64: 64, 32>}, {pipeline_mode = #tpu.pipeline_mode<synchronous>, transform_indices = @transform_6, window_bounds = array<i64: 64, 32>}, {pipeline_mode = #tpu.pipeline_mode<synchronous>, transform_indices = @transform_7, window_bounds = array<i64: 32, 32>}, {pipeline_mode = #tpu.pipeline_mode<synchronous>, transform_indices = @transform_8, window_bounds = array<i64: 32, 32>}, {pipeline_mode = #tpu.pipeline_mode<synchronous>, transform_indices = @transform_9, window_bounds = array<i64: 32, 32>}, {pipeline_mode = #tpu.pipeline_mode<synchronous>, transform_indices = @transform_10, window_bounds = array<i64: 1, 32>}, {pipeline_mode = #tpu.pipeline_mode<synchronous>, transform_indices = @transform_11, window_bounds = array<i64: 1, 32>}, {pipeline_mode = #tpu.pipeline_mode<synchronous>, transform_indices = @transform_12, window_bounds = array<i64: 1, 32>}, {pipeline_mode = #tpu.pipeline_mode<synchronous>, transform_indices = @transform_13, window_bounds = array<i64: 1, 32>}, {pipeline_mode = #tpu.pipeline_mode<synchronous>, transform_indices = @transform_14, window_bounds = array<i64: 1, 32>}, {pipeline_mode = #tpu.pipeline_mode<synchronous>, transform_indices = @transform_15, window_bounds = array<i64: 1, 32>}, {pipeline_mode = #tpu.pipeline_mode<synchronous>, transform_indices = @transform_16, window_bounds = array<i64: 2, 32>}]} {
    %c0 = arith.constant 0 : index
    %c0_0 = arith.constant 0 : index
    %0 = vector.load %arg2[%c0, %c0_0] : memref<16x16xf32, #tpu.memory_space<vmem>>, vector<16x16xf32>
    %c0_1 = arith.constant 0 : index
    %c0_2 = arith.constant 0 : index
    %1 = vector.load %arg1[%c0_1, %c0_2] : memref<16x32xf32, #tpu.memory_space<vmem>>, vector<16x32xf32>
    %cst = arith.constant dense<0.000000e+00> : vector<16x32xf32>
    %2 = tpu.matmul %0, %1, %cst {dimension_numbers = #tpu.dot_dimension_numbers<[1], [0], [0], [1], [0, 0, 1, 1], [], []>} : vector<16x16xf32>, vector<16x32xf32>, vector<16x32xf32> -> vector<16x32xf32>
    %c0_3 = arith.constant 0 : index
    %c0_4 = arith.constant 0 : index
    %3 = vector.load %arg3[%c0_3, %c0_4] : memref<32x64xf32, #tpu.memory_space<vmem>>, vector<32x64xf32>
    %cst_5 = arith.constant dense<0.000000e+00> : vector<16x64xf32>
    %4 = tpu.matmul %2, %3, %cst_5 {dimension_numbers = #tpu.dot_dimension_numbers<[1], [0], [0], [1], [0, 0, 1, 1], [], []>} : vector<16x32xf32>, vector<32x64xf32>, vector<16x64xf32> -> vector<16x64xf32>
    %c0_6 = arith.constant 0 : index
    %c0_7 = arith.constant 0 : index
    %5 = vector.load %arg4[%c0_6, %c0_7] : memref<1x64xf32, #tpu.memory_space<vmem>>, vector<1x64xf32>
    %6 = vector.broadcast %5 : vector<1x64xf32> to vector<16x64xf32>
    %7 = arith.addf %4, %6 : vector<16x64xf32>
    %cst_8 = arith.constant 0.000000e+00 : f32
    %8 = vector.broadcast %cst_8 : f32 to vector<16x64xf32>
    %9 = arith.cmpf ogt, %7, %8 : vector<16x64xf32>
    %cst_9 = arith.constant 2.000000e-01 : f32
    %10 = vector.broadcast %cst_9 : f32 to vector<16x64xf32>
    %11 = arith.mulf %10, %7 : vector<16x64xf32>
    %12 = arith.select %9, %7, %11 : vector<16x64xi1>, vector<16x64xf32>
    %c0_10 = arith.constant 0 : index
    %c0_11 = arith.constant 0 : index
    %13 = vector.load %arg5[%c0_10, %c0_11] : memref<64x32xf32, #tpu.memory_space<vmem>>, vector<64x32xf32>
    %cst_12 = arith.constant dense<0.000000e+00> : vector<16x32xf32>
    %14 = tpu.matmul %12, %13, %cst_12 {dimension_numbers = #tpu.dot_dimension_numbers<[1], [0], [0], [1], [0, 0, 1, 1], [], []>} : vector<16x64xf32>, vector<64x32xf32>, vector<16x32xf32> -> vector<16x32xf32>
    %c0_13 = arith.constant 0 : index
    %c0_14 = arith.constant 0 : index
    %15 = vector.load %arg11[%c0_13, %c0_14] : memref<1x32xf32, #tpu.memory_space<vmem>>, vector<1x32xf32>
    %16 = vector.broadcast %15 : vector<1x32xf32> to vector<16x32xf32>
    %17 = arith.addf %14, %16 : vector<16x32xf32>
    %c0_15 = arith.constant 0 : index
    %c0_16 = arith.constant 0 : index
    %18 = vector.load %arg6[%c0_15, %c0_16] : memref<64x32xf32, #tpu.memory_space<vmem>>, vector<64x32xf32>
    %cst_17 = arith.constant dense<0.000000e+00> : vector<16x32xf32>
    %19 = tpu.matmul %12, %18, %cst_17 {dimension_numbers = #tpu.dot_dimension_numbers<[1], [0], [0], [1], [0, 0, 1, 1], [], []>} : vector<16x64xf32>, vector<64x32xf32>, vector<16x32xf32> -> vector<16x32xf32>
    %c0_18 = arith.constant 0 : index
    %c0_19 = arith.constant 0 : index
    %20 = vector.load %arg12[%c0_18, %c0_19] : memref<1x32xf32, #tpu.memory_space<vmem>>, vector<1x32xf32>
    %21 = vector.broadcast %20 : vector<1x32xf32> to vector<16x32xf32>
    %22 = arith.addf %19, %21 : vector<16x32xf32>
    %c0_20 = arith.constant 0 : index
    %c0_21 = arith.constant 0 : index
    %23 = vector.load %arg7[%c0_20, %c0_21] : memref<64x32xf32, #tpu.memory_space<vmem>>, vector<64x32xf32>
    %cst_22 = arith.constant dense<0.000000e+00> : vector<16x32xf32>
    %24 = tpu.matmul %12, %23, %cst_22 {dimension_numbers = #tpu.dot_dimension_numbers<[1], [0], [0], [1], [0, 0, 1, 1], [], []>} : vector<16x64xf32>, vector<64x32xf32>, vector<16x32xf32> -> vector<16x32xf32>
    %c0_23 = arith.constant 0 : index
    %c0_24 = arith.constant 0 : index
    %25 = vector.load %arg13[%c0_23, %c0_24] : memref<1x32xf32, #tpu.memory_space<vmem>>, vector<1x32xf32>
    %26 = vector.broadcast %25 : vector<1x32xf32> to vector<16x32xf32>
    %27 = arith.addf %24, %26 : vector<16x32xf32>
    %c0_25 = arith.constant 0 : index
    %c0_26 = arith.constant 0 : index
    %28 = vector.load %arg8[%c0_25, %c0_26] : memref<32x32xf32, #tpu.memory_space<vmem>>, vector<32x32xf32>
    %c0_27 = arith.constant 0 : index
    %c0_28 = arith.constant 0 : index
    %29 = vector.load %arg9[%c0_27, %c0_28] : memref<32x32xf32, #tpu.memory_space<vmem>>, vector<32x32xf32>
    %c0_29 = arith.constant 0 : index
    %c0_30 = arith.constant 0 : index
    %30 = vector.load %arg10[%c0_29, %c0_30] : memref<32x32xf32, #tpu.memory_space<vmem>>, vector<32x32xf32>
    %c0_31 = arith.constant 0 : index
    %c0_32 = arith.constant 0 : index
    %31 = vector.load %arg14[%c0_31, %c0_32] : memref<1x32xf32, #tpu.memory_space<vmem>>, vector<1x32xf32>
    %c0_33 = arith.constant 0 : index
    %c0_34 = arith.constant 0 : index
    %32 = vector.load %arg15[%c0_33, %c0_34] : memref<1x32xf32, #tpu.memory_space<vmem>>, vector<1x32xf32>
    %c0_35 = arith.constant 0 : index
    %c0_36 = arith.constant 0 : index
    %33 = vector.load %arg16[%c0_35, %c0_36] : memref<1x32xf32, #tpu.memory_space<vmem>>, vector<1x32xf32>
    %cst_37 = arith.constant 0.000000e+00 : f32
    %34 = vector.broadcast %cst_37 : f32 to vector<2x32xf32>
    %cst_38 = arith.constant dense<0.000000e+00> : vector<2x32xf32>
    %35 = tpu.matmul %34, %28, %cst_38 {dimension_numbers = #tpu.dot_dimension_numbers<[1], [0], [0], [1], [0, 0, 1, 1], [], []>} : vector<2x32xf32>, vector<32x32xf32>, vector<2x32xf32> -> vector<2x32xf32>
    %36 = vector.broadcast %31 : vector<1x32xf32> to vector<2x32xf32>
    %37 = arith.addf %35, %36 : vector<2x32xf32>
    %cst_39 = arith.constant dense<0.000000e+00> : vector<2x32xf32>
    %38 = tpu.matmul %34, %29, %cst_39 {dimension_numbers = #tpu.dot_dimension_numbers<[1], [0], [0], [1], [0, 0, 1, 1], [], []>} : vector<2x32xf32>, vector<32x32xf32>, vector<2x32xf32> -> vector<2x32xf32>
    %39 = vector.broadcast %32 : vector<1x32xf32> to vector<2x32xf32>
    %40 = arith.addf %38, %39 : vector<2x32xf32>
    %cst_40 = arith.constant dense<0.000000e+00> : vector<2x32xf32>
    %41 = tpu.matmul %34, %30, %cst_40 {dimension_numbers = #tpu.dot_dimension_numbers<[1], [0], [0], [1], [0, 0, 1, 1], [], []>} : vector<2x32xf32>, vector<32x32xf32>, vector<2x32xf32> -> vector<2x32xf32>
    %42 = vector.broadcast %33 : vector<1x32xf32> to vector<2x32xf32>
    %43 = arith.addf %41, %42 : vector<2x32xf32>
    %44 = vector.extract_strided_slice %17 {offsets = [0, 0], sizes = [2, 32], strides = [1, 1]} : vector<16x32xf32> to vector<2x32xf32>
    %45 = arith.addf %44, %37 : vector<2x32xf32>
    %46 = arith.negf %45 : vector<2x32xf32>
    %47 = math.exp %46 : vector<2x32xf32>
    %cst_41 = arith.constant 1.000000e+00 : f32
    %48 = vector.broadcast %cst_41 : f32 to vector<2x32xf32>
    %49 = arith.addf %48, %47 : vector<2x32xf32>
    %50 = arith.divf %48, %49 : vector<2x32xf32>
    %51 = vector.extract_strided_slice %22 {offsets = [0, 0], sizes = [2, 32], strides = [1, 1]} : vector<16x32xf32> to vector<2x32xf32>
    %52 = arith.addf %51, %40 : vector<2x32xf32>
    %53 = arith.negf %52 : vector<2x32xf32>
    %54 = math.exp %53 : vector<2x32xf32>
    %cst_42 = arith.constant 1.000000e+00 : f32
    %55 = vector.broadcast %cst_42 : f32 to vector<2x32xf32>
    %56 = arith.addf %55, %54 : vector<2x32xf32>
    %57 = arith.divf %55, %56 : vector<2x32xf32>
    %58 = vector.extract_strided_slice %27 {offsets = [0, 0], sizes = [2, 32], strides = [1, 1]} : vector<16x32xf32> to vector<2x32xf32>
    %59 = arith.mulf %50, %43 : vector<2x32xf32>
    %60 = arith.addf %58, %59 : vector<2x32xf32>
    %61 = math.tanh %60 : vector<2x32xf32>
    %cst_43 = arith.constant 1.000000e+00 : f32
    %62 = vector.broadcast %cst_43 : f32 to vector<2x32xf32>
    %63 = arith.subf %62, %57 : vector<2x32xf32>
    %64 = arith.mulf %63, %61 : vector<2x32xf32>
    %65 = arith.mulf %57, %34 : vector<2x32xf32>
    %66 = arith.addf %64, %65 : vector<2x32xf32>
    %cst_44 = arith.constant dense<0.000000e+00> : vector<2x32xf32>
    %67 = tpu.matmul %66, %28, %cst_44 {dimension_numbers = #tpu.dot_dimension_numbers<[1], [0], [0], [1], [0, 0, 1, 1], [], []>} : vector<2x32xf32>, vector<32x32xf32>, vector<2x32xf32> -> vector<2x32xf32>
    %68 = vector.broadcast %31 : vector<1x32xf32> to vector<2x32xf32>
    %69 = arith.addf %67, %68 : vector<2x32xf32>
    %cst_45 = arith.constant dense<0.000000e+00> : vector<2x32xf32>
    %70 = tpu.matmul %66, %29, %cst_45 {dimension_numbers = #tpu.dot_dimension_numbers<[1], [0], [0], [1], [0, 0, 1, 1], [], []>} : vector<2x32xf32>, vector<32x32xf32>, vector<2x32xf32> -> vector<2x32xf32>
    %71 = vector.broadcast %32 : vector<1x32xf32> to vector<2x32xf32>
    %72 = arith.addf %70, %71 : vector<2x32xf32>
    %cst_46 = arith.constant dense<0.000000e+00> : vector<2x32xf32>
    %73 = tpu.matmul %66, %30, %cst_46 {dimension_numbers = #tpu.dot_dimension_numbers<[1], [0], [0], [1], [0, 0, 1, 1], [], []>} : vector<2x32xf32>, vector<32x32xf32>, vector<2x32xf32> -> vector<2x32xf32>
    %74 = vector.broadcast %33 : vector<1x32xf32> to vector<2x32xf32>
    %75 = arith.addf %73, %74 : vector<2x32xf32>
    %76 = vector.extract_strided_slice %17 {offsets = [2, 0], sizes = [2, 32], strides = [1, 1]} : vector<16x32xf32> to vector<2x32xf32>
    %77 = arith.addf %76, %69 : vector<2x32xf32>
    %78 = arith.negf %77 : vector<2x32xf32>
    %79 = math.exp %78 : vector<2x32xf32>
    %cst_47 = arith.constant 1.000000e+00 : f32
    %80 = vector.broadcast %cst_47 : f32 to vector<2x32xf32>
    %81 = arith.addf %80, %79 : vector<2x32xf32>
    %82 = arith.divf %80, %81 : vector<2x32xf32>
    %83 = vector.extract_strided_slice %22 {offsets = [2, 0], sizes = [2, 32], strides = [1, 1]} : vector<16x32xf32> to vector<2x32xf32>
    %84 = arith.addf %83, %72 : vector<2x32xf32>
    %85 = arith.negf %84 : vector<2x32xf32>
    %86 = math.exp %85 : vector<2x32xf32>
    %cst_48 = arith.constant 1.000000e+00 : f32
    %87 = vector.broadcast %cst_48 : f32 to vector<2x32xf32>
    %88 = arith.addf %87, %86 : vector<2x32xf32>
    %89 = arith.divf %87, %88 : vector<2x32xf32>
    %90 = vector.extract_strided_slice %27 {offsets = [2, 0], sizes = [2, 32], strides = [1, 1]} : vector<16x32xf32> to vector<2x32xf32>
    %91 = arith.mulf %82, %75 : vector<2x32xf32>
    %92 = arith.addf %90, %91 : vector<2x32xf32>
    %93 = math.tanh %92 : vector<2x32xf32>
    %cst_49 = arith.constant 1.000000e+00 : f32
    %94 = vector.broadcast %cst_49 : f32 to vector<2x32xf32>
    %95 = arith.subf %94, %89 : vector<2x32xf32>
    %96 = arith.mulf %95, %93 : vector<2x32xf32>
    %97 = arith.mulf %89, %66 : vector<2x32xf32>
    %98 = arith.addf %96, %97 : vector<2x32xf32>
    %cst_50 = arith.constant dense<0.000000e+00> : vector<2x32xf32>
    %99 = tpu.matmul %98, %28, %cst_50 {dimension_numbers = #tpu.dot_dimension_numbers<[1], [0], [0], [1], [0, 0, 1, 1], [], []>} : vector<2x32xf32>, vector<32x32xf32>, vector<2x32xf32> -> vector<2x32xf32>
    %100 = vector.broadcast %31 : vector<1x32xf32> to vector<2x32xf32>
    %101 = arith.addf %99, %100 : vector<2x32xf32>
    %cst_51 = arith.constant dense<0.000000e+00> : vector<2x32xf32>
    %102 = tpu.matmul %98, %29, %cst_51 {dimension_numbers = #tpu.dot_dimension_numbers<[1], [0], [0], [1], [0, 0, 1, 1], [], []>} : vector<2x32xf32>, vector<32x32xf32>, vector<2x32xf32> -> vector<2x32xf32>
    %103 = vector.broadcast %32 : vector<1x32xf32> to vector<2x32xf32>
    %104 = arith.addf %102, %103 : vector<2x32xf32>
    %cst_52 = arith.constant dense<0.000000e+00> : vector<2x32xf32>
    %105 = tpu.matmul %98, %30, %cst_52 {dimension_numbers = #tpu.dot_dimension_numbers<[1], [0], [0], [1], [0, 0, 1, 1], [], []>} : vector<2x32xf32>, vector<32x32xf32>, vector<2x32xf32> -> vector<2x32xf32>
    %106 = vector.broadcast %33 : vector<1x32xf32> to vector<2x32xf32>
    %107 = arith.addf %105, %106 : vector<2x32xf32>
    %108 = vector.extract_strided_slice %17 {offsets = [4, 0], sizes = [2, 32], strides = [1, 1]} : vector<16x32xf32> to vector<2x32xf32>
    %109 = arith.addf %108, %101 : vector<2x32xf32>
    %110 = arith.negf %109 : vector<2x32xf32>
    %111 = math.exp %110 : vector<2x32xf32>
    %cst_53 = arith.constant 1.000000e+00 : f32
    %112 = vector.broadcast %cst_53 : f32 to vector<2x32xf32>
    %113 = arith.addf %112, %111 : vector<2x32xf32>
    %114 = arith.divf %112, %113 : vector<2x32xf32>
    %115 = vector.extract_strided_slice %22 {offsets = [4, 0], sizes = [2, 32], strides = [1, 1]} : vector<16x32xf32> to vector<2x32xf32>
    %116 = arith.addf %115, %104 : vector<2x32xf32>
    %117 = arith.negf %116 : vector<2x32xf32>
    %118 = math.exp %117 : vector<2x32xf32>
    %cst_54 = arith.constant 1.000000e+00 : f32
    %119 = vector.broadcast %cst_54 : f32 to vector<2x32xf32>
    %120 = arith.addf %119, %118 : vector<2x32xf32>
    %121 = arith.divf %119, %120 : vector<2x32xf32>
    %122 = vector.extract_strided_slice %27 {offsets = [4, 0], sizes = [2, 32], strides = [1, 1]} : vector<16x32xf32> to vector<2x32xf32>
    %123 = arith.mulf %114, %107 : vector<2x32xf32>
    %124 = arith.addf %122, %123 : vector<2x32xf32>
    %125 = math.tanh %124 : vector<2x32xf32>
    %cst_55 = arith.constant 1.000000e+00 : f32
    %126 = vector.broadcast %cst_55 : f32 to vector<2x32xf32>
    %127 = arith.subf %126, %121 : vector<2x32xf32>
    %128 = arith.mulf %127, %125 : vector<2x32xf32>
    %129 = arith.mulf %121, %98 : vector<2x32xf32>
    %130 = arith.addf %128, %129 : vector<2x32xf32>
    %cst_56 = arith.constant dense<0.000000e+00> : vector<2x32xf32>
    %131 = tpu.matmul %130, %28, %cst_56 {dimension_numbers = #tpu.dot_dimension_numbers<[1], [0], [0], [1], [0, 0, 1, 1], [], []>} : vector<2x32xf32>, vector<32x32xf32>, vector<2x32xf32> -> vector<2x32xf32>
    %132 = vector.broadcast %31 : vector<1x32xf32> to vector<2x32xf32>
    %133 = arith.addf %131, %132 : vector<2x32xf32>
    %cst_57 = arith.constant dense<0.000000e+00> : vector<2x32xf32>
    %134 = tpu.matmul %130, %29, %cst_57 {dimension_numbers = #tpu.dot_dimension_numbers<[1], [0], [0], [1], [0, 0, 1, 1], [], []>} : vector<2x32xf32>, vector<32x32xf32>, vector<2x32xf32> -> vector<2x32xf32>
    %135 = vector.broadcast %32 : vector<1x32xf32> to vector<2x32xf32>
    %136 = arith.addf %134, %135 : vector<2x32xf32>
    %cst_58 = arith.constant dense<0.000000e+00> : vector<2x32xf32>
    %137 = tpu.matmul %130, %30, %cst_58 {dimension_numbers = #tpu.dot_dimension_numbers<[1], [0], [0], [1], [0, 0, 1, 1], [], []>} : vector<2x32xf32>, vector<32x32xf32>, vector<2x32xf32> -> vector<2x32xf32>
    %138 = vector.broadcast %33 : vector<1x32xf32> to vector<2x32xf32>
    %139 = arith.addf %137, %138 : vector<2x32xf32>
    %140 = vector.extract_strided_slice %17 {offsets = [6, 0], sizes = [2, 32], strides = [1, 1]} : vector<16x32xf32> to vector<2x32xf32>
    %141 = arith.addf %140, %133 : vector<2x32xf32>
    %142 = arith.negf %141 : vector<2x32xf32>
    %143 = math.exp %142 : vector<2x32xf32>
    %cst_59 = arith.constant 1.000000e+00 : f32
    %144 = vector.broadcast %cst_59 : f32 to vector<2x32xf32>
    %145 = arith.addf %144, %143 : vector<2x32xf32>
    %146 = arith.divf %144, %145 : vector<2x32xf32>
    %147 = vector.extract_strided_slice %22 {offsets = [6, 0], sizes = [2, 32], strides = [1, 1]} : vector<16x32xf32> to vector<2x32xf32>
    %148 = arith.addf %147, %136 : vector<2x32xf32>
    %149 = arith.negf %148 : vector<2x32xf32>
    %150 = math.exp %149 : vector<2x32xf32>
    %cst_60 = arith.constant 1.000000e+00 : f32
    %151 = vector.broadcast %cst_60 : f32 to vector<2x32xf32>
    %152 = arith.addf %151, %150 : vector<2x32xf32>
    %153 = arith.divf %151, %152 : vector<2x32xf32>
    %154 = vector.extract_strided_slice %27 {offsets = [6, 0], sizes = [2, 32], strides = [1, 1]} : vector<16x32xf32> to vector<2x32xf32>
    %155 = arith.mulf %146, %139 : vector<2x32xf32>
    %156 = arith.addf %154, %155 : vector<2x32xf32>
    %157 = math.tanh %156 : vector<2x32xf32>
    %cst_61 = arith.constant 1.000000e+00 : f32
    %158 = vector.broadcast %cst_61 : f32 to vector<2x32xf32>
    %159 = arith.subf %158, %153 : vector<2x32xf32>
    %160 = arith.mulf %159, %157 : vector<2x32xf32>
    %161 = arith.mulf %153, %130 : vector<2x32xf32>
    %162 = arith.addf %160, %161 : vector<2x32xf32>
    %cst_62 = arith.constant dense<0.000000e+00> : vector<2x32xf32>
    %163 = tpu.matmul %162, %28, %cst_62 {dimension_numbers = #tpu.dot_dimension_numbers<[1], [0], [0], [1], [0, 0, 1, 1], [], []>} : vector<2x32xf32>, vector<32x32xf32>, vector<2x32xf32> -> vector<2x32xf32>
    %164 = vector.broadcast %31 : vector<1x32xf32> to vector<2x32xf32>
    %165 = arith.addf %163, %164 : vector<2x32xf32>
    %cst_63 = arith.constant dense<0.000000e+00> : vector<2x32xf32>
    %166 = tpu.matmul %162, %29, %cst_63 {dimension_numbers = #tpu.dot_dimension_numbers<[1], [0], [0], [1], [0, 0, 1, 1], [], []>} : vector<2x32xf32>, vector<32x32xf32>, vector<2x32xf32> -> vector<2x32xf32>
    %167 = vector.broadcast %32 : vector<1x32xf32> to vector<2x32xf32>
    %168 = arith.addf %166, %167 : vector<2x32xf32>
    %cst_64 = arith.constant dense<0.000000e+00> : vector<2x32xf32>
    %169 = tpu.matmul %162, %30, %cst_64 {dimension_numbers = #tpu.dot_dimension_numbers<[1], [0], [0], [1], [0, 0, 1, 1], [], []>} : vector<2x32xf32>, vector<32x32xf32>, vector<2x32xf32> -> vector<2x32xf32>
    %170 = vector.broadcast %33 : vector<1x32xf32> to vector<2x32xf32>
    %171 = arith.addf %169, %170 : vector<2x32xf32>
    %172 = vector.extract_strided_slice %17 {offsets = [8, 0], sizes = [2, 32], strides = [1, 1]} : vector<16x32xf32> to vector<2x32xf32>
    %173 = arith.addf %172, %165 : vector<2x32xf32>
    %174 = arith.negf %173 : vector<2x32xf32>
    %175 = math.exp %174 : vector<2x32xf32>
    %cst_65 = arith.constant 1.000000e+00 : f32
    %176 = vector.broadcast %cst_65 : f32 to vector<2x32xf32>
    %177 = arith.addf %176, %175 : vector<2x32xf32>
    %178 = arith.divf %176, %177 : vector<2x32xf32>
    %179 = vector.extract_strided_slice %22 {offsets = [8, 0], sizes = [2, 32], strides = [1, 1]} : vector<16x32xf32> to vector<2x32xf32>
    %180 = arith.addf %179, %168 : vector<2x32xf32>
    %181 = arith.negf %180 : vector<2x32xf32>
    %182 = math.exp %181 : vector<2x32xf32>
    %cst_66 = arith.constant 1.000000e+00 : f32
    %183 = vector.broadcast %cst_66 : f32 to vector<2x32xf32>
    %184 = arith.addf %183, %182 : vector<2x32xf32>
    %185 = arith.divf %183, %184 : vector<2x32xf32>
    %186 = vector.extract_strided_slice %27 {offsets = [8, 0], sizes = [2, 32], strides = [1, 1]} : vector<16x32xf32> to vector<2x32xf32>
    %187 = arith.mulf %178, %171 : vector<2x32xf32>
    %188 = arith.addf %186, %187 : vector<2x32xf32>
    %189 = math.tanh %188 : vector<2x32xf32>
    %cst_67 = arith.constant 1.000000e+00 : f32
    %190 = vector.broadcast %cst_67 : f32 to vector<2x32xf32>
    %191 = arith.subf %190, %185 : vector<2x32xf32>
    %192 = arith.mulf %191, %189 : vector<2x32xf32>
    %193 = arith.mulf %185, %162 : vector<2x32xf32>
    %194 = arith.addf %192, %193 : vector<2x32xf32>
    %cst_68 = arith.constant dense<0.000000e+00> : vector<2x32xf32>
    %195 = tpu.matmul %194, %28, %cst_68 {dimension_numbers = #tpu.dot_dimension_numbers<[1], [0], [0], [1], [0, 0, 1, 1], [], []>} : vector<2x32xf32>, vector<32x32xf32>, vector<2x32xf32> -> vector<2x32xf32>
    %196 = vector.broadcast %31 : vector<1x32xf32> to vector<2x32xf32>
    %197 = arith.addf %195, %196 : vector<2x32xf32>
    %cst_69 = arith.constant dense<0.000000e+00> : vector<2x32xf32>
    %198 = tpu.matmul %194, %29, %cst_69 {dimension_numbers = #tpu.dot_dimension_numbers<[1], [0], [0], [1], [0, 0, 1, 1], [], []>} : vector<2x32xf32>, vector<32x32xf32>, vector<2x32xf32> -> vector<2x32xf32>
    %199 = vector.broadcast %32 : vector<1x32xf32> to vector<2x32xf32>
    %200 = arith.addf %198, %199 : vector<2x32xf32>
    %cst_70 = arith.constant dense<0.000000e+00> : vector<2x32xf32>
    %201 = tpu.matmul %194, %30, %cst_70 {dimension_numbers = #tpu.dot_dimension_numbers<[1], [0], [0], [1], [0, 0, 1, 1], [], []>} : vector<2x32xf32>, vector<32x32xf32>, vector<2x32xf32> -> vector<2x32xf32>
    %202 = vector.broadcast %33 : vector<1x32xf32> to vector<2x32xf32>
    %203 = arith.addf %201, %202 : vector<2x32xf32>
    %204 = vector.extract_strided_slice %17 {offsets = [10, 0], sizes = [2, 32], strides = [1, 1]} : vector<16x32xf32> to vector<2x32xf32>
    %205 = arith.addf %204, %197 : vector<2x32xf32>
    %206 = arith.negf %205 : vector<2x32xf32>
    %207 = math.exp %206 : vector<2x32xf32>
    %cst_71 = arith.constant 1.000000e+00 : f32
    %208 = vector.broadcast %cst_71 : f32 to vector<2x32xf32>
    %209 = arith.addf %208, %207 : vector<2x32xf32>
    %210 = arith.divf %208, %209 : vector<2x32xf32>
    %211 = vector.extract_strided_slice %22 {offsets = [10, 0], sizes = [2, 32], strides = [1, 1]} : vector<16x32xf32> to vector<2x32xf32>
    %212 = arith.addf %211, %200 : vector<2x32xf32>
    %213 = arith.negf %212 : vector<2x32xf32>
    %214 = math.exp %213 : vector<2x32xf32>
    %cst_72 = arith.constant 1.000000e+00 : f32
    %215 = vector.broadcast %cst_72 : f32 to vector<2x32xf32>
    %216 = arith.addf %215, %214 : vector<2x32xf32>
    %217 = arith.divf %215, %216 : vector<2x32xf32>
    %218 = vector.extract_strided_slice %27 {offsets = [10, 0], sizes = [2, 32], strides = [1, 1]} : vector<16x32xf32> to vector<2x32xf32>
    %219 = arith.mulf %210, %203 : vector<2x32xf32>
    %220 = arith.addf %218, %219 : vector<2x32xf32>
    %221 = math.tanh %220 : vector<2x32xf32>
    %cst_73 = arith.constant 1.000000e+00 : f32
    %222 = vector.broadcast %cst_73 : f32 to vector<2x32xf32>
    %223 = arith.subf %222, %217 : vector<2x32xf32>
    %224 = arith.mulf %223, %221 : vector<2x32xf32>
    %225 = arith.mulf %217, %194 : vector<2x32xf32>
    %226 = arith.addf %224, %225 : vector<2x32xf32>
    %cst_74 = arith.constant dense<0.000000e+00> : vector<2x32xf32>
    %227 = tpu.matmul %226, %28, %cst_74 {dimension_numbers = #tpu.dot_dimension_numbers<[1], [0], [0], [1], [0, 0, 1, 1], [], []>} : vector<2x32xf32>, vector<32x32xf32>, vector<2x32xf32> -> vector<2x32xf32>
    %228 = vector.broadcast %31 : vector<1x32xf32> to vector<2x32xf32>
    %229 = arith.addf %227, %228 : vector<2x32xf32>
    %cst_75 = arith.constant dense<0.000000e+00> : vector<2x32xf32>
    %230 = tpu.matmul %226, %29, %cst_75 {dimension_numbers = #tpu.dot_dimension_numbers<[1], [0], [0], [1], [0, 0, 1, 1], [], []>} : vector<2x32xf32>, vector<32x32xf32>, vector<2x32xf32> -> vector<2x32xf32>
    %231 = vector.broadcast %32 : vector<1x32xf32> to vector<2x32xf32>
    %232 = arith.addf %230, %231 : vector<2x32xf32>
    %cst_76 = arith.constant dense<0.000000e+00> : vector<2x32xf32>
    %233 = tpu.matmul %226, %30, %cst_76 {dimension_numbers = #tpu.dot_dimension_numbers<[1], [0], [0], [1], [0, 0, 1, 1], [], []>} : vector<2x32xf32>, vector<32x32xf32>, vector<2x32xf32> -> vector<2x32xf32>
    %234 = vector.broadcast %33 : vector<1x32xf32> to vector<2x32xf32>
    %235 = arith.addf %233, %234 : vector<2x32xf32>
    %236 = vector.extract_strided_slice %17 {offsets = [12, 0], sizes = [2, 32], strides = [1, 1]} : vector<16x32xf32> to vector<2x32xf32>
    %237 = arith.addf %236, %229 : vector<2x32xf32>
    %238 = arith.negf %237 : vector<2x32xf32>
    %239 = math.exp %238 : vector<2x32xf32>
    %cst_77 = arith.constant 1.000000e+00 : f32
    %240 = vector.broadcast %cst_77 : f32 to vector<2x32xf32>
    %241 = arith.addf %240, %239 : vector<2x32xf32>
    %242 = arith.divf %240, %241 : vector<2x32xf32>
    %243 = vector.extract_strided_slice %22 {offsets = [12, 0], sizes = [2, 32], strides = [1, 1]} : vector<16x32xf32> to vector<2x32xf32>
    %244 = arith.addf %243, %232 : vector<2x32xf32>
    %245 = arith.negf %244 : vector<2x32xf32>
    %246 = math.exp %245 : vector<2x32xf32>
    %cst_78 = arith.constant 1.000000e+00 : f32
    %247 = vector.broadcast %cst_78 : f32 to vector<2x32xf32>
    %248 = arith.addf %247, %246 : vector<2x32xf32>
    %249 = arith.divf %247, %248 : vector<2x32xf32>
    %250 = vector.extract_strided_slice %27 {offsets = [12, 0], sizes = [2, 32], strides = [1, 1]} : vector<16x32xf32> to vector<2x32xf32>
    %251 = arith.mulf %242, %235 : vector<2x32xf32>
    %252 = arith.addf %250, %251 : vector<2x32xf32>
    %253 = math.tanh %252 : vector<2x32xf32>
    %cst_79 = arith.constant 1.000000e+00 : f32
    %254 = vector.broadcast %cst_79 : f32 to vector<2x32xf32>
    %255 = arith.subf %254, %249 : vector<2x32xf32>
    %256 = arith.mulf %255, %253 : vector<2x32xf32>
    %257 = arith.mulf %249, %226 : vector<2x32xf32>
    %258 = arith.addf %256, %257 : vector<2x32xf32>
    %cst_80 = arith.constant dense<0.000000e+00> : vector<2x32xf32>
    %259 = tpu.matmul %258, %28, %cst_80 {dimension_numbers = #tpu.dot_dimension_numbers<[1], [0], [0], [1], [0, 0, 1, 1], [], []>} : vector<2x32xf32>, vector<32x32xf32>, vector<2x32xf32> -> vector<2x32xf32>
    %260 = vector.broadcast %31 : vector<1x32xf32> to vector<2x32xf32>
    %261 = arith.addf %259, %260 : vector<2x32xf32>
    %cst_81 = arith.constant dense<0.000000e+00> : vector<2x32xf32>
    %262 = tpu.matmul %258, %29, %cst_81 {dimension_numbers = #tpu.dot_dimension_numbers<[1], [0], [0], [1], [0, 0, 1, 1], [], []>} : vector<2x32xf32>, vector<32x32xf32>, vector<2x32xf32> -> vector<2x32xf32>
    %263 = vector.broadcast %32 : vector<1x32xf32> to vector<2x32xf32>
    %264 = arith.addf %262, %263 : vector<2x32xf32>
    %cst_82 = arith.constant dense<0.000000e+00> : vector<2x32xf32>
    %265 = tpu.matmul %258, %30, %cst_82 {dimension_numbers = #tpu.dot_dimension_numbers<[1], [0], [0], [1], [0, 0, 1, 1], [], []>} : vector<2x32xf32>, vector<32x32xf32>, vector<2x32xf32> -> vector<2x32xf32>
    %266 = vector.broadcast %33 : vector<1x32xf32> to vector<2x32xf32>
    %267 = arith.addf %265, %266 : vector<2x32xf32>
    %268 = vector.extract_strided_slice %17 {offsets = [14, 0], sizes = [2, 32], strides = [1, 1]} : vector<16x32xf32> to vector<2x32xf32>
    %269 = arith.addf %268, %261 : vector<2x32xf32>
    %270 = arith.negf %269 : vector<2x32xf32>
    %271 = math.exp %270 : vector<2x32xf32>
    %cst_83 = arith.constant 1.000000e+00 : f32
    %272 = vector.broadcast %cst_83 : f32 to vector<2x32xf32>
    %273 = arith.addf %272, %271 : vector<2x32xf32>
    %274 = arith.divf %272, %273 : vector<2x32xf32>
    %275 = vector.extract_strided_slice %22 {offsets = [14, 0], sizes = [2, 32], strides = [1, 1]} : vector<16x32xf32> to vector<2x32xf32>
    %276 = arith.addf %275, %264 : vector<2x32xf32>
    %277 = arith.negf %276 : vector<2x32xf32>
    %278 = math.exp %277 : vector<2x32xf32>
    %cst_84 = arith.constant 1.000000e+00 : f32
    %279 = vector.broadcast %cst_84 : f32 to vector<2x32xf32>
    %280 = arith.addf %279, %278 : vector<2x32xf32>
    %281 = arith.divf %279, %280 : vector<2x32xf32>
    %282 = vector.extract_strided_slice %27 {offsets = [14, 0], sizes = [2, 32], strides = [1, 1]} : vector<16x32xf32> to vector<2x32xf32>
    %283 = arith.mulf %274, %267 : vector<2x32xf32>
    %284 = arith.addf %282, %283 : vector<2x32xf32>
    %285 = math.tanh %284 : vector<2x32xf32>
    %cst_85 = arith.constant 1.000000e+00 : f32
    %286 = vector.broadcast %cst_85 : f32 to vector<2x32xf32>
    %287 = arith.subf %286, %281 : vector<2x32xf32>
    %288 = arith.mulf %287, %285 : vector<2x32xf32>
    %289 = arith.mulf %281, %258 : vector<2x32xf32>
    %290 = arith.addf %288, %289 : vector<2x32xf32>
    %291 = math.tanh %290 : vector<2x32xf32>
    %c0_86 = arith.constant 0 : index
    %c0_87 = arith.constant 0 : index
    %292 = vector.load %arg17[%c0_86, %c0_87] : memref<2x32xf32, #tpu.memory_space<vmem>>, vector<2x32xf32>
    tpu.vector_store %arg17[%c0_86, %c0_87], %291 {strides = array<i32>} : memref<2x32xf32, #tpu.memory_space<vmem>>, vector<2x32xf32>,
    return
  }
  func.func @transform_0(%arg0: i32) -> (i32, i32) {
    %c0_i32 = arith.constant 0 : i32
    %c0_i32_0 = arith.constant 0 : i32
    %c0_i32_1 = arith.constant 0 : i32
    return %c0_i32, %c0_i32_0 : i32, i32
  }
  func.func @transform_1(%arg0: i32) -> (i32, i32) {
    %c0_i32 = arith.constant 0 : i32
    %c0_i32_0 = arith.constant 0 : i32
    %c0_i32_1 = arith.constant 0 : i32
    return %c0_i32, %c0_i32_0 : i32, i32
  }
  func.func @transform_2(%arg0: i32) -> (i32, i32) {
    %c0_i32 = arith.constant 0 : i32
    %c0_i32_0 = arith.constant 0 : i32
    %c0_i32_1 = arith.constant 0 : i32
    return %c0_i32, %c0_i32_0 : i32, i32
  }
  func.func @transform_3(%arg0: i32) -> (i32, i32) {
    %c0_i32 = arith.constant 0 : i32
    %c0_i32_0 = arith.constant 0 : i32
    %c0_i32_1 = arith.constant 0 : i32
    return %c0_i32, %c0_i32_0 : i32, i32
  }
  func.func @transform_4(%arg0: i32) -> (i32, i32) {
    %c0_i32 = arith.constant 0 : i32
    %c0_i32_0 = arith.constant 0 : i32
    %c0_i32_1 = arith.constant 0 : i32
    return %c0_i32, %c0_i32_0 : i32, i32
  }
  func.func @transform_5(%arg0: i32) -> (i32, i32) {
    %c0_i32 = arith.constant 0 : i32
    %c0_i32_0 = arith.constant 0 : i32
    %c0_i32_1 = arith.constant 0 : i32
    return %c0_i32, %c0_i32_0 : i32, i32
  }
  func.func @transform_6(%arg0: i32) -> (i32, i32) {
    %c0_i32 = arith.constant 0 : i32
    %c0_i32_0 = arith.constant 0 : i32
    %c0_i32_1 = arith.constant 0 : i32
    return %c0_i32, %c0_i32_0 : i32, i32
  }
  func.func @transform_7(%arg0: i32) -> (i32, i32) {
    %c0_i32 = arith.constant 0 : i32
    %c0_i32_0 = arith.constant 0 : i32
    %c0_i32_1 = arith.constant 0 : i32
    return %c0_i32, %c0_i32_0 : i32, i32
  }
  func.func @transform_8(%arg0: i32) -> (i32, i32) {
    %c0_i32 = arith.constant 0 : i32
    %c0_i32_0 = arith.constant 0 : i32
    %c0_i32_1 = arith.constant 0 : i32
    return %c0_i32, %c0_i32_0 : i32, i32
  }
  func.func @transform_9(%arg0: i32) -> (i32, i32) {
    %c0_i32 = arith.constant 0 : i32
    %c0_i32_0 = arith.constant 0 : i32
    %c0_i32_1 = arith.constant 0 : i32
    return %c0_i32, %c0_i32_0 : i32, i32
  }
  func.func @transform_10(%arg0: i32) -> (i32, i32) {
    %c0_i32 = arith.constant 0 : i32
    %c0_i32_0 = arith.constant 0 : i32
    %c0_i32_1 = arith.constant 0 : i32
    return %c0_i32, %c0_i32_0 : i32, i32
  }
  func.func @transform_11(%arg0: i32) -> (i32, i32) {
    %c0_i32 = arith.constant 0 : i32
    %c0_i32_0 = arith.constant 0 : i32
    %c0_i32_1 = arith.constant 0 : i32
    return %c0_i32, %c0_i32_0 : i32, i32
  }
  func.func @transform_12(%arg0: i32) -> (i32, i32) {
    %c0_i32 = arith.constant 0 : i32
    %c0_i32_0 = arith.constant 0 : i32
    %c0_i32_1 = arith.constant 0 : i32
    return %c0_i32, %c0_i32_0 : i32, i32
  }
  func.func @transform_13(%arg0: i32) -> (i32, i32) {
    %c0_i32 = arith.constant 0 : i32
    %c0_i32_0 = arith.constant 0 : i32
    %c0_i32_1 = arith.constant 0 : i32
    return %c0_i32, %c0_i32_0 : i32, i32
  }
  func.func @transform_14(%arg0: i32) -> (i32, i32) {
    %c0_i32 = arith.constant 0 : i32
    %c0_i32_0 = arith.constant 0 : i32
    %c0_i32_1 = arith.constant 0 : i32
    return %c0_i32, %c0_i32_0 : i32, i32
  }
  func.func @transform_15(%arg0: i32) -> (i32, i32) {
    %c0_i32 = arith.constant 0 : i32
    %c0_i32_0 = arith.constant 0 : i32
    %c0_i32_1 = arith.constant 0 : i32
    return %c0_i32, %c0_i32_0 : i32, i32
  }
  func.func @transform_16(%arg0: i32) -> (i32, i32) {
    %c0_i32 = arith.constant 0 : i32
    %c0_i32_0 = arith.constant 0 : i32
    %c0_i32_1 = arith.constant 0 : i32
    return %c0_i32, %c0_i32_0 : i32, i32
  }
}

</mosaic_0001>

<bundles_post_ra>
// kernel: generator_forward.1
= control target key start
LH: loop header
LB: loop body
LE: loop exit
PB: predicated region body
PF: predicated region fallthrough
CT: control target
= control target key end

     0   :  { %s1904_s0 = inlined_call_operand.vmem [shape: f32[16,32], index: 0, kind: input, shape index: {}]   ;;  %s1905_s1 = inlined_call_operand.vmem [shape: f32[16,16], index: 1, kind: input, shape index: {}]   ;;  %s1906_s2 = inlined_call_operand.vmem [shape: f32[32,64], index: 2, kind: input, shape index: {}]   ;;  %s1907_s3 = inlined_call_operand.vmem [shape: f32[1,64], index: 3, kind: input, shape index: {}]   ;;  %s1908_s4 = inlined_call_operand.vmem [shape: f32[64,32], index: 4, kind: input, shape index: {}]   ;;  %s1909_s5 = inlined_call_operand.vmem [shape: f32[64,32], index: 5, kind: input, shape index: {}]   ;;  %s1910_s6 = inlined_call_operand.vmem [shape: f32[64,32], index: 6, kind: input, shape index: {}]   ;;  %s1911_s7 = inlined_call_operand.vmem [shape: f32[32,32], index: 7, kind: input, shape index: {}]   ;;  %s1912_s8 = inlined_call_operand.vmem [shape: f32[32,32], index: 8, kind: input, shape index: {}]   ;;  %s1913_s9 = inlined_call_operand.vmem [shape: f32[32,32], index: 9, kind: input, shape index: {}]   ;;  %s1914_s10 = inlined_call_operand.vmem [shape: f32[1,32], index: 10, kind: input, shape index: {}]   ;;  %s1915_s11 = inlined_call_operand.vmem [shape: f32[1,32], index: 11, kind: input, shape index: {}]   ;;  %s1916_s12 = inlined_call_operand.vmem [shape: f32[1,32], index: 12, kind: input, shape index: {}]   ;;  %s1917_s13 = inlined_call_operand.vmem [shape: f32[1,32], index: 13, kind: input, shape index: {}]   ;;  %s1918_s14 = inlined_call_operand.vmem [shape: f32[1,32], index: 14, kind: input, shape index: {}]   ;;  %s1919_s15 = inlined_call_operand.vmem [shape: f32[1,32], index: 15, kind: input, shape index: {}]   ;;  %s1920_s16 = inlined_call_operand.hbm [shape: f32[2,32], index: 16, kind: output, shape index: {}]  }
   0x1   :  { %1922 = sst [smem:[#allocation5_spill]] %s1904_s0 }
   0x2   :  { %s1923_s23 = sld [smem:[#allocation5_spill]]  ;;  %v54_v2 = vld [vmem:[%s1905_s1] sm:$0xff]  ;;  %vm58_vm0 = vcmask 130048   ;;  %v91_v3 = vld [vmem:[%s1906_s2 + $0x18] sm:$0xff]  ;;  %v90_v4 = vld [vmem:[%s1906_s2 + $0x10] sm:$0xff] }
   0x3   :  { %115 = vmatpush.msra.mxu1 %v91_v3  ;;  %v89_v5 = vld [vmem:[%s1906_s2 + $0x8] sm:$0xff] }
   0x5   :  { %116 = vmatpush.msra.mxu1 %v90_v4 }
   0x8   :  { %v57_v0 = vld [vmem:[%s1923_s23 + $0x8] sm:$0xff]  ;;  %v56_v1 = vld [vmem:[%s1923_s23] sm:$0xff] }
   0x9   :  { %79 = vmatpush.msra.mxu0 %v57_v0 }
   0xb   :  { %80 = vmatpush.msra.mxu0 %v56_v1 }
   0xc   :  { %1239 = vmatmul.msk.f32.vlgmr.msra.gmra.mxu0 %vm58_vm0, %v54_v2 }
   0xd   :  { %21 = vsyncpa [#allocation3], 0  ;;  %117 = vmatpush.msra.mxu1 %v89_v5  ;;  %v55_v6 = vld [vmem:[%s1905_s1 + $0x8] sm:$0xff]  ;;  %v88_v7 = vld [vmem:[%s1906_s2] sm:$0xff]  ;;  %vm96_vm1 = vcmask 261120   ;;  %v1403_v39 = vmov 0.0  }
   0xe   :  { %v139_v8 = vld [vmem:[%s1908_s4 + $0x38] sm:$0xff]  ;;  %v138_v11 = vld [vmem:[%s1908_s4 + $0x30] sm:$0xff]  ;;  %v137_v14 = vld [vmem:[%s1908_s4 + $0x28] sm:$0xff]  ;;  %vm144_vm3 = vcmask 523264  }
   0xf   :  { %118 = vmatpush.msra.mxu1 %v88_v7  ;;  %v181_v9 = vld [vmem:[%s1909_s5 + $0x38] sm:$0xff]  ;;  %159 = vmatpush.msra.mxu2 %v139_v8  ;;  %v180_v12 = vld [vmem:[%s1909_s5 + $0x30] sm:$0xff]  ;;  %v179_v15 = vld [vmem:[%s1909_s5 + $0x28] sm:$0xff] }
  0x10   :  { %v216_v10 = vld [vmem:[%s1910_s6 + $0x38] sm:$0xff]  ;;  %194 = vmatpush.msra.mxu3 %v181_v9  ;;  %v215_v13 = vld [vmem:[%s1910_s6 + $0x30] sm:$0xff]  ;;  %v214_v16 = vld [vmem:[%s1910_s6 + $0x28] sm:$0xff] }
  0x11   :  { %229 = vmatpush.msrb.mxu0 %v216_v10  ;;  %160 = vmatpush.msra.mxu2 %v138_v11  ;;  %v1544_v17 = vld [vmem:[%s1911_s7 + $0x18] sm:$0xff]  ;;  %v136_v18 = vld [vmem:[%s1908_s4 + $0x20] sm:$0xff]  ;;  %v1559_v21 = vld [vmem:[%s1911_s7 + $0x10] sm:$0xff] }
  0x12   :  { %195 = vmatpush.msra.mxu3 %v180_v12  ;;  %277 = vmatpush.msrb.mxu1 %v1544_v17  ;;  %v178_v19 = vld [vmem:[%s1909_s5 + $0x20] sm:$0xff]  ;;  %v135_v22 = vld [vmem:[%s1908_s4 + $0x18] sm:$0xff]  ;;  %v134_v27 = vld [vmem:[%s1908_s4 + $0x10] sm:$0xff] }
  0x13   :  { %230 = vmatpush.msrb.mxu0 %v215_v13  ;;  %161 = vmatpush.msra.mxu2 %v137_v14  ;;  %v213_v20 = vld [vmem:[%s1910_s6 + $0x20] sm:$0xff]  ;;  %v177_v23 = vld [vmem:[%s1909_s5 + $0x18] sm:$0xff]  ;;  %v176_v28 = vld [vmem:[%s1909_s5 + $0x10] sm:$0xff] }
  0x14   :  { %1240 = vmatmul.msk.f32.gmra.mxu0 %vm58_vm0, %v55_v6  ;;  %196 = vmatpush.msra.mxu3 %v179_v15  ;;  %v212_v24 = vld [vmem:[%s1910_s6 + $0x18] sm:$0xff]  ;;  %v211_v29 = vld [vmem:[%s1910_s6 + $0x10] sm:$0xff]  ;;  %v1585_v30 = vld [vmem:[%s1911_s7 + $0x8] sm:$0xff] }
  0x15   :  { %231 = vmatpush.msrb.mxu0 %v214_v16  ;;  %278 = vmatpush.msrb.mxu1 %v1559_v21  ;;  %v133_v31 = vld [vmem:[%s1908_s4 + $0x8] sm:$0xff]  ;;  %v1600_v34 = vld [vmem:[%s1911_s7] sm:$0xff]  ;;  %v1615_v38 = vld [vmem:[%s1912_s8 + $0x18] sm:$0xff] }
  0x16   :  { %162 = vmatpush.msra.mxu2 %v136_v18  ;;  %197 = vmatpush.msra.mxu3 %v178_v19  ;;  %v175_v32 = vld [vmem:[%s1909_s5 + $0x8] sm:$0xff]  ;;  %v132_v35 = vld [vmem:[%s1908_s4] sm:$0xff]  ;;  %v1622_v40 = vld [vmem:[%s1912_s8 + $0x10] sm:$0xff] }
  0x17   :  { %232 = vmatpush.msrb.mxu0 %v213_v20  ;;  %279 = vmatpush.msrb.mxu1 %v1585_v30  ;;  %v210_v33 = vld [vmem:[%s1910_s6 + $0x8] sm:$0xff]  ;;  %v174_v36 = vld [vmem:[%s1909_s5] sm:$0xff]  ;;  %v1643_v43 = vld [vmem:[%s1913_s9 + $0x18] sm:$0xff] }
  0x18   :  { %163 = vmatpush.msra.mxu2 %v135_v22  ;;  %198 = vmatpush.msra.mxu3 %v177_v23  ;;  %v209_v37 = vld [vmem:[%s1910_s6] sm:$0xff]  ;;  %v1628_v41 = vld [vmem:[%s1912_s8 + $0x8] sm:$0xff]  ;;  %v1648_v44 = vld [vmem:[%s1913_s9 + $0x10] sm:$0xff]  ;;  %s1230_s6 = sshll.u32 %s1920_s16, 4  ;;  %s1231_s6 = int_to_ptr.hbm [resolvable:$true] %s1230_s6 }
  0x19   :  { %233 = vmatpush.msrb.mxu0 %v212_v24  ;;  %280 = vmatpush.msrb.mxu1 %v1600_v34  ;;  %v1636_v42 = vld [vmem:[%s1912_s8] sm:$0xff]  ;;  %v1660_v45 = vld [vmem:[%s1913_s9 + $0x8] sm:$0xff] }
  0x1a   :  { %164 = vmatpush.msra.mxu2 %v134_v27  ;;  %199 = vmatpush.msra.mxu3 %v176_v28  ;;  %v1665_v46 = vld [vmem:[%s1913_s9] sm:$0xff] }
  0x1b   :  { %234 = vmatpush.msrb.mxu0 %v211_v29  ;;  %v1288_v47 = vld [vmem:[%s1907_s3] ss:$0 sm:$0xff] }
  0x1c   :  { %165 = vmatpush.msra.mxu2 %v133_v31  ;;  %200 = vmatpush.msra.mxu3 %v175_v32  ;;  %v1707_v57 = vld [vmem:[%s1917_s13] ss:$0 sm:$0xff] }
  0x1d   :  { %235 = vmatpush.msrb.mxu0 %v210_v33  ;;  %v1712_v58 = vld [vmem:[%s1918_s14] ss:$0 sm:$0xff] }
  0x1e   :  { %166 = vmatpush.msra.mxu2 %v132_v35  ;;  %201 = vmatpush.msra.mxu3 %v174_v36  ;;  %v1291_v60 = vld [vmem:[%s1914_s10] ss:$0 sm:$0xff] }
  0x1f   :  { %236 = vmatpush.msrb.mxu0 %v209_v37  ;;  %v1720_v61 = vld [vmem:[%s1915_s11] ss:$0 sm:$0xff] }
  0x20   :  { %393 = vmatpush.msrb.mxu3 %v1544_v17  ;;  %323 = vmatpush.msrb.mxu2 %v1643_v43  ;;  %v1736_v19 = vld [vmem:[%s1919_s15] ss:$0 sm:$0xff] }
  0x21   :  { %413 = vmatpush.msra.mxu0 %v1615_v38  ;;  %v1741_v28 = vld [vmem:[%s1916_s12] ss:$0 sm:$0xff]  ;;  %s1404_s12 = smov [#allocation2]  }
  0x22   :  { %394 = vmatpush.msrb.mxu3 %v1559_v21  ;;  %324 = vmatpush.msrb.mxu2 %v1648_v44  ;;  %s1228_s15 = sshll.u32 %s1404_s12, 4  ;;  %s1229_s15 = int_to_ptr.vmem [resolvable:$true] %s1228_s15 }
  0x23   :  { %414 = vmatpush.msra.mxu0 %v1622_v40 }
  0x24   :  { %395 = vmatpush.msrb.mxu3 %v1585_v30  ;;  %325 = vmatpush.msrb.mxu2 %v1660_v45 }
  0x25   :  { %415 = vmatpush.msra.mxu0 %v1628_v41 }
  0x26   :  { %396 = vmatpush.msrb.mxu3 %v1600_v34  ;;  %326 = vmatpush.msrb.mxu2 %v1665_v46 }
  0x27   :  { %416 = vmatpush.msra.mxu0 %v1636_v42 }
  0x89   :  { %v82_v25 = vpop.f32.mrf.mxu0 }
  0x8a   :  { %1241 = vmatmul.msk.f32.vlgmr.msra.gmra.mxu1 %vm96_vm1, %v82_v25 }
  0x8b   :  { %300 = vmatpush.msra.mxu1 %v1615_v38 }
  0x8d   :  { %301 = vmatpush.msra.mxu1 %v1622_v40 }
  0x8f   :  { %302 = vmatpush.msra.mxu1 %v1628_v41 }
  0x91   :  { %v85_v26 = vpop.f32.mrf.mxu0  ;;  %303 = vmatpush.msra.mxu1 %v1636_v42 }
  0x92   :  { %1242 = vmatmul.msk.f32.gmra.mxu1 %vm96_vm1, %v85_v26 }
  0x9a   :  { %281 = vmatmul.f32.vlgmr.msrb.gmra.mxu1 %v1403_v39 }
  0x9b   :  { %433 = vmatpush.msrb.mxu1 %v1643_v43 }
  0x9d   :  { %434 = vmatpush.msrb.mxu1 %v1648_v44 }
  0x9f   :  { %435 = vmatpush.msrb.mxu1 %v1660_v45 }
  0xa1   :  { %436 = vmatpush.msrb.mxu1 %v1665_v46 }
  0xa2   :  { %304 = vmatmul.f32.vlgmr.msra.gmra.mxu1 %v1403_v39 }
  0xa3   :  { %637 = vmatpush.msra.mxu1 %v1544_v17 }
  0xa5   :  { %638 = vmatpush.msra.mxu1 %v1559_v21 }
  0xa7   :  { %639 = vmatpush.msra.mxu1 %v1585_v30 }
  0xa9   :  { %640 = vmatpush.msra.mxu1 %v1600_v34 }
 0x107   :  { %v120_v48 = vpop.f32.mrf.mxu1 }
 0x108   :  { %v121_v49 = vadd.f32 %v1288_v47, %v120_v48 }
 0x10a   :  { %v128_v50 = vmul.f32 0.2, %v121_v49  ;;  %vm126_vm2 = vcmp.gt.f32.partialorder %v121_v49, 0.0 }
 0x10c   :  { %v130_v51 = vsel %vm126_vm2, %v121_v49, %v128_v50 }
 0x10d   :  { %1243 = vmatmul.msk.f32.vlgmr.msra.gmra.mxu2 %vm144_vm3, %v130_v51  ;;  %1245 = vmatmul.msk.f32.vlgmr.msra.gmra.mxu3 %vm144_vm3, %v130_v51 }
 0x10e   :  { %1247 = vmatmul.msk.f32.vlgmr.msrb.gmra.mxu0 %vm144_vm3, %v130_v51  ;;  %515 = vmatpush.msra.mxu2 %v1544_v17 }
 0x10f   :  { %v123_v52 = vpop.f32.mrf.mxu1  ;;  %535 = vmatpush.msra.mxu3 %v1615_v38  ;;  %555 = vmatpush.msrb.mxu0 %v1643_v43 }
 0x110   :  { %v124_v53 = vadd.f32 %v1288_v47, %v123_v52  ;;  %516 = vmatpush.msra.mxu2 %v1559_v21 }
 0x111   :  { %536 = vmatpush.msra.mxu3 %v1622_v40  ;;  %556 = vmatpush.msrb.mxu0 %v1648_v44 }
 0x112   :  { %v129_v54 = vmul.f32 0.2, %v124_v53  ;;  %vm127_vm4 = vcmp.gt.f32.partialorder %v124_v53, 0.0  ;;  %517 = vmatpush.msra.mxu2 %v1585_v30 }
 0x113   :  { %537 = vmatpush.msra.mxu3 %v1628_v41  ;;  %557 = vmatpush.msrb.mxu0 %v1660_v45 }
 0x114   :  { %v131_v55 = vsel %vm127_vm4, %v124_v53, %v129_v54  ;;  %518 = vmatpush.msra.mxu2 %v1600_v34 }
 0x115   :  { %1244 = vmatmul.msk.f32.gmra.mxu2 %vm144_vm3, %v131_v55  ;;  %1246 = vmatmul.msk.f32.gmra.mxu3 %vm144_vm3, %v131_v55 }
 0x116   :  { %1248 = vmatmul.msk.f32.gmra.mxu0 %vm144_vm3, %v131_v55  ;;  %538 = vmatpush.msra.mxu3 %v1636_v42 }
 0x117   :  { %558 = vmatpush.msrb.mxu0 %v1665_v46  ;;  %v282_v56 = vpop.f32.mrf.mxu1 }
 0x118   :  { %v283_v62 = vadd.f32 %v1707_v57, %v282_v56 }
 0x11d   :  { %327 = vmatmul.f32.vlgmr.msrb.gmra.mxu2 %v1403_v39 }
 0x11e   :  { %657 = vmatpush.msrb.mxu2 %v1615_v38 }
 0x11f   :  { %v305_v59 = vpop.f32.mrf.mxu1 }
 0x120   :  { %658 = vmatpush.msrb.mxu2 %v1622_v40  ;;  %v306_v63 = vadd.f32 %v1712_v58, %v305_v59 }
 0x122   :  { %659 = vmatpush.msrb.mxu2 %v1628_v41 }
 0x124   :  { %660 = vmatpush.msrb.mxu2 %v1636_v42 }
 0x18b   :  { %v238_v32 = vpop.f32.mrf.mxu0 }
 0x18c   :  { %v1745_v39 = vadd.f32 %v1741_v28, %v238_v32 }
 0x190   :  { %v168_v0 = vpop.f32.mrf.mxu2  ;;  %v203_v1 = vpop.f32.mrf.mxu3 }
 0x191   :  { %v1724_v2 = vadd.f32 %v1291_v60, %v168_v0  ;;  %v1727_v3 = vadd.f32 %v1720_v61, %v203_v1 }
 0x193   :  { %v331_v4 = vadd.f32 %v283_v62, %v1724_v2  ;;  %v351_v5 = vadd.f32 %v306_v63, %v1727_v3  ;;  %v1768_v62 = vpop.f32.mrf.mxu0 }
 0x195   :  { %v1249_v6 = vmul.f32 -1.442695, %v331_v4  ;;  %v1250_v7 = vmul.f32 -1.442695, %v351_v5 }
 0x197   :  { %1295 = vpow2.f32 %v1249_v6 }
 0x198   :  { %1297 = vpow2.f32 %v1250_v7  ;;  %v171_v8 = vpop.f32.mrf.mxu2  ;;  %v1770_v63 = vpop.f32.mrf.mxu3 }
 0x199   :  { %v1731_v9 = vadd.f32 %v1291_v60, %v171_v8 }
 0x19d   :  { %v1296_v10 = vpop.eup %1295 }
 0x19e   :  { %v1298_v11 = vpop.eup %1297  ;;  %v335_v12 = vadd.f32 1.0, %v1296_v10 }
 0x19f   :  { %v355_v13 = vadd.f32 1.0, %v1298_v11 }
 0x1a0   :  { %1299 = vrcp.f32 %v335_v12  ;;  %v328_v23 = vpop.f32.mrf.mxu2  ;;  %v347_v24 = vand.u32 2147483648, %v335_v12  ;;  %v345_v26 = vand.u32 2147483647, %v335_v12  ;;  %vm341_vm6 = vweird.f32 %v335_v12 }
 0x1a1   :  { %1301 = vrcp.f32 %v355_v13  ;;  %v329_v29 = vadd.f32 %v1736_v19, %v328_v23  ;;  %v367_v48 = vand.u32 2147483648, %v355_v13  ;;  %vm361_vm10 = vweird.f32 %v355_v13 }
 0x1a2   :  { %v348_v33 = vor.u32 1.1754944e-38, %v347_v24  ;;  %vm346_vm8 = vcmp.eq.f32.partialorder %v345_v26, 8.507059e+37  ;;  %v365_v49 = vand.u32 2147483647, %v355_v13 }
 0x1a3   :  { %v368_v52 = vor.u32 1.1754944e-38, %v367_v48 }
 0x1a4   :  { %vm366_vm12 = vcmp.eq.f32.partialorder %v365_v49, 8.507059e+37 }
 0x1a6   :  { %v1300_v14 = vpop.eup %1299 }
 0x1a7   :  { %v1302_v15 = vpop.eup %1301  ;;  %v337_v16 = vmul.f32 %v1300_v14, %v335_v12  ;;  %vm342_vm5 = vweird.f32 %v1300_v14 }
 0x1a8   :  { %v357_v18 = vmul.f32 %v1302_v15, %v355_v13  ;;  %vm343_vm7 = vmor %vm341_vm6, %vm342_vm5  ;;  %vm362_vm9 = vweird.f32 %v1302_v15 }
 0x1a9   :  { %v338_v20 = vsub.f32 1.0, %v337_v16  ;;  %vm363_vm11 = vmor %vm361_vm10, %vm362_vm9 }
 0x1aa   :  { %v358_v22 = vsub.f32 1.0, %v357_v18 }
 0x1ab   :  { %v339_v25 = vmul.f32 %v1300_v14, %v338_v20 }
 0x1ac   :  { %v359_v27 = vmul.f32 %v1302_v15, %v358_v22 }
 0x1ad   :  { %v340_v31 = vadd.f32 %v1300_v14, %v339_v25 }
 0x1ae   :  { %v360_v37 = vadd.f32 %v1302_v15, %v359_v27 }
 0x1af   :  { %v344_v35 = vsel %vm343_vm7, %v1300_v14, %v340_v31 }
 0x1b0   :  { %v349_v36 = vsel %vm346_vm8, %v348_v33, %v344_v35  ;;  %v364_v51 = vsel %vm363_vm11, %v1302_v15, %v360_v37 }
 0x1b1   :  { %v371_v47 = vmul.f32 %v349_v36, %v329_v29  ;;  %v369_v53 = vsel %vm366_vm12, %v368_v52, %v364_v51 }
 0x1b2   :  { %v374_v54 = vsub.f32 1.0, %v369_v53  ;;  %v376_v59 = vmul.f32 0.0, %v369_v53 }
 0x1b3   :  { %v372_v50 = vadd.f32 %v371_v47, %v1745_v39 }
 0x1b5   :  { %1303 = vtanh.f32 %v372_v50 }
 0x1bb   :  { %v1304_v55 = vpop.eup %1303 }
 0x1bc   :  { %v375_v56 = vmul.f32 %v1304_v55, %v374_v54 }
 0x1be   :  { %v1748_v60 = vadd.f32 %v376_v59, %v375_v56 }
 0x1c0   :  { %1251 = vmatmul.msk.f32.vlgmr.msrb.gmra.mxu3 %vm96_vm1, %v1748_v60  ;;  %1252 = vmatmul.msk.f32.vlgmr.msra.gmra.mxu0 %vm96_vm1, %v1748_v60  ;;  %v495_v59 = vrot.slane %v1748_v60, 6 }
 0x1c1   :  { %1253 = vmatmul.msk.f32.vlgmr.msrb.gmra.mxu1 %vm96_vm1, %v1748_v60  ;;  %677 = vmatpush.msrb.mxu3 %v1643_v43 }
 0x1c2   :  { %759 = vmatpush.msra.mxu0 %v1544_v17  ;;  %779 = vmatpush.msrb.mxu1 %v1615_v38 }
 0x1c3   :  { %678 = vmatpush.msrb.mxu3 %v1648_v44 }
 0x1c4   :  { %760 = vmatpush.msra.mxu0 %v1559_v21  ;;  %780 = vmatpush.msrb.mxu1 %v1622_v40 }
 0x1c5   :  { %679 = vmatpush.msrb.mxu3 %v1660_v45 }
 0x1c6   :  { %761 = vmatpush.msra.mxu0 %v1585_v30  ;;  %781 = vmatpush.msrb.mxu1 %v1628_v41 }
 0x1c7   :  { %680 = vmatpush.msrb.mxu3 %v1665_v46 }
 0x1c8   :  { %762 = vmatpush.msra.mxu0 %v1600_v34  ;;  %782 = vmatpush.msrb.mxu1 %v1636_v42 }
 0x23d   :  { %v418_v0 = vpop.f32.mrf.mxu0 }
 0x23e   :  { %v419_v1 = vadd.f32 %v1712_v58, %v418_v0  ;;  %v438_v25 = vpop.f32.mrf.mxu1 }
 0x23f   :  { %v439_v29 = vadd.f32 %v1736_v19, %v438_v25 }
 0x240   :  { %v465_v4 = vrot.slane %v419_v1, 6 }
 0x241   :  { %v488_v37 = vrot.slane %v439_v29, 6 }
 0x242   :  { %v467_v5 = vadd.f32 %v465_v4, %v1727_v3 }
 0x243   :  { %v398_v6 = vpop.f32.mrf.mxu3 }
 0x244   :  { %v1255_v7 = vmul.f32 -1.442695, %v467_v5  ;;  %v399_v8 = vadd.f32 %v1707_v57, %v398_v6 }
 0x246   :  { %1305 = vpow2.f32 %v1255_v7  ;;  %v442_v10 = vrot.slane %v399_v8, 6 }
 0x248   :  { %v444_v11 = vadd.f32 %v442_v10, %v1724_v2 }
 0x24a   :  { %v1254_v12 = vmul.f32 -1.442695, %v444_v11 }
 0x24c   :  { %v1306_v13 = vpop.eup %1305  ;;  %1307 = vpow2.f32 %v1254_v12 }
 0x24d   :  { %v471_v14 = vadd.f32 1.0, %v1306_v13 }
 0x24f   :  { %1309 = vrcp.f32 %v471_v14  ;;  %v483_v50 = vand.u32 2147483648, %v471_v14  ;;  %vm477_vm3 = vweird.f32 %v471_v14  ;;  %v481_v52 = vand.u32 2147483647, %v471_v14 }
 0x251   :  { %v484_v55 = vor.u32 1.1754944e-38, %v483_v50  ;;  %vm482_vm5 = vcmp.eq.f32.partialorder %v481_v52, 8.507059e+37 }
 0x252   :  { %v1308_v15 = vpop.eup %1307 }
 0x253   :  { %v448_v16 = vadd.f32 1.0, %v1308_v15 }
 0x255   :  { %1311 = vrcp.f32 %v448_v16  ;;  %v1310_v18 = vpop.eup %1309  ;;  %v460_v27 = vand.u32 2147483648, %v448_v16  ;;  %v458_v32 = vand.u32 2147483647, %v448_v16  ;;  %vm454_vm14 = vweird.f32 %v448_v16 }
 0x256   :  { %v473_v20 = vmul.f32 %v1310_v18, %v471_v14  ;;  %vm478_vm2 = vweird.f32 %v1310_v18 }
 0x257   :  { %v461_v36 = vor.u32 1.1754944e-38, %v460_v27  ;;  %vm459_vm0 = vcmp.eq.f32.partialorder %v458_v32, 8.507059e+37  ;;  %vm479_vm4 = vmor %vm477_vm3, %vm478_vm2 }
 0x258   :  { %v474_v24 = vsub.f32 1.0, %v473_v20 }
 0x25a   :  { %v475_v33 = vmul.f32 %v1310_v18, %v474_v24 }
 0x25b   :  { %v1312_v22 = vpop.eup %1311 }
 0x25c   :  { %v450_v23 = vmul.f32 %v1312_v22, %v448_v16  ;;  %vm455_vm13 = vweird.f32 %v1312_v22  ;;  %v476_v48 = vadd.f32 %v1310_v18, %v475_v33 }
 0x25d   :  { %vm456_vm15 = vmor %vm454_vm14, %vm455_vm13 }
 0x25e   :  { %v451_v26 = vsub.f32 1.0, %v450_v23  ;;  %v480_v54 = vsel %vm479_vm4, %v1310_v18, %v476_v48 }
 0x25f   :  { %v485_v56 = vsel %vm482_vm5, %v484_v55, %v480_v54 }
 0x260   :  { %v452_v31 = vmul.f32 %v1312_v22, %v451_v26  ;;  %v493_v0 = vsub.f32 1.0, %v485_v56  ;;  %v497_v5 = vmul.f32 %v495_v59, %v485_v56 }
 0x262   :  { %v453_v35 = vadd.f32 %v1312_v22, %v452_v31 }
 0x264   :  { %v457_v47 = vsel %vm456_vm15, %v1312_v22, %v453_v35 }
 0x265   :  { %v462_v49 = vsel %vm459_vm0, %v461_v36, %v457_v47 }
 0x266   :  { %v490_v51 = vmul.f32 %v488_v37, %v462_v49 }
 0x268   :  { %v491_v53 = vadd.f32 %v490_v51, %v1745_v39 }
 0x26a   :  { %1313 = vtanh.f32 %v491_v53 }
 0x270   :  { %v1314_v1 = vpop.eup %1313 }
 0x271   :  { %v494_v4 = vmul.f32 %v1314_v1, %v493_v0 }
 0x273   :  { %v1779_v6 = vadd.f32 %v497_v5, %v494_v4 }
 0x275   :  { %v500_v7 = vrot.slane %v1779_v6, 2 }
 0x277   :  { %1256 = vmatmul.msk.f32.vlgmr.msra.gmra.mxu2 %vm96_vm1, %v500_v7  ;;  %1257 = vmatmul.msk.f32.vlgmr.msra.gmra.mxu3 %vm96_vm1, %v500_v7 }
 0x278   :  { %1258 = vmatmul.msk.f32.vlgmr.msrb.gmra.mxu0 %vm96_vm1, %v500_v7  ;;  %799 = vmatpush.msra.mxu2 %v1643_v43  ;;  %v617_v7 = vrot.slane %v1779_v6, 6 }
 0x279   :  { %870 = vmatpush.msra.mxu3 %v1544_v17  ;;  %890 = vmatpush.msrb.mxu0 %v1615_v38 }
 0x27a   :  { %800 = vmatpush.msra.mxu2 %v1648_v44 }
 0x27b   :  { %871 = vmatpush.msra.mxu3 %v1559_v21  ;;  %891 = vmatpush.msrb.mxu0 %v1622_v40 }
 0x27c   :  { %801 = vmatpush.msra.mxu2 %v1660_v45 }
 0x27d   :  { %872 = vmatpush.msra.mxu3 %v1585_v30  ;;  %892 = vmatpush.msrb.mxu0 %v1628_v41 }
 0x27e   :  { %802 = vmatpush.msra.mxu2 %v1665_v46 }
 0x27f   :  { %873 = vmatpush.msra.mxu3 %v1600_v34  ;;  %893 = vmatpush.msrb.mxu0 %v1636_v42 }
 0x2f5   :  { %v560_v29 = vpop.f32.mrf.mxu0 }
 0x2f6   :  { %v561_v36 = vadd.f32 %v1736_v19, %v560_v29 }
 0x2f8   :  { %v610_v51 = vrot.slane %v561_v36, 4 }
 0x2fa   :  { %v520_v60 = vpop.f32.mrf.mxu2  ;;  %v540_v8 = vpop.f32.mrf.mxu3 }
 0x2fb   :  { %v521_v10 = vadd.f32 %v1707_v57, %v520_v60  ;;  %v541_v11 = vadd.f32 %v1712_v58, %v540_v8 }
 0x2fd   :  { %v564_v12 = vrot.slane %v521_v10, 4  ;;  %v587_v13 = vrot.slane %v541_v11, 4 }
 0x2ff   :  { %v566_v14 = vadd.f32 %v564_v12, %v1724_v2  ;;  %v589_v15 = vadd.f32 %v587_v13, %v1727_v3 }
 0x301   :  { %v1259_v16 = vmul.f32 -1.442695, %v566_v14  ;;  %v1260_v18 = vmul.f32 -1.442695, %v589_v15 }
 0x303   :  { %1315 = vpow2.f32 %v1259_v16 }
 0x304   :  { %1317 = vpow2.f32 %v1260_v18 }
 0x309   :  { %v1316_v20 = vpop.eup %1315 }
 0x30a   :  { %v1318_v22 = vpop.eup %1317  ;;  %v570_v23 = vadd.f32 1.0, %v1316_v20 }
 0x30b   :  { %v593_v24 = vadd.f32 1.0, %v1318_v22 }
 0x30c   :  { %1319 = vrcp.f32 %v570_v23  ;;  %v582_v33 = vand.u32 2147483648, %v570_v23  ;;  %v580_v47 = vand.u32 2147483647, %v570_v23  ;;  %vm576_vm7 = vweird.f32 %v570_v23 }
 0x30d   :  { %1321 = vrcp.f32 %v593_v24  ;;  %v605_v56 = vand.u32 2147483648, %v593_v24  ;;  %vm599_vm11 = vweird.f32 %v593_v24  ;;  %v603_v59 = vand.u32 2147483647, %v593_v24 }
 0x30e   :  { %v583_v50 = vor.u32 1.1754944e-38, %v582_v33  ;;  %vm581_vm9 = vcmp.eq.f32.partialorder %v580_v47, 8.507059e+37 }
 0x30f   :  { %v606_v4 = vor.u32 1.1754944e-38, %v605_v56  ;;  %vm604_vm13 = vcmp.eq.f32.partialorder %v603_v59, 8.507059e+37 }
 0x312   :  { %v1320_v25 = vpop.eup %1319 }
 0x313   :  { %v1322_v26 = vpop.eup %1321  ;;  %v572_v27 = vmul.f32 %v1320_v25, %v570_v23  ;;  %vm577_vm6 = vweird.f32 %v1320_v25 }
 0x314   :  { %v595_v31 = vmul.f32 %v1322_v26, %v593_v24  ;;  %vm578_vm8 = vmor %vm576_vm7, %vm577_vm6  ;;  %vm600_vm10 = vweird.f32 %v1322_v26 }
 0x315   :  { %v573_v32 = vsub.f32 1.0, %v572_v27  ;;  %vm601_vm12 = vmor %vm599_vm11, %vm600_vm10 }
 0x316   :  { %v596_v35 = vsub.f32 1.0, %v595_v31 }
 0x317   :  { %v574_v37 = vmul.f32 %v1320_v25, %v573_v32 }
 0x318   :  { %v597_v48 = vmul.f32 %v1322_v26, %v596_v35 }
 0x319   :  { %v575_v49 = vadd.f32 %v1320_v25, %v574_v37 }
 0x31a   :  { %v598_v54 = vadd.f32 %v1322_v26, %v597_v48 }
 0x31b   :  { %v579_v52 = vsel %vm578_vm8, %v1320_v25, %v575_v49 }
 0x31c   :  { %v584_v53 = vsel %vm581_vm9, %v583_v50, %v579_v52  ;;  %v602_v1 = vsel %vm601_vm12, %v1322_v26, %v598_v54 }
 0x31d   :  { %v612_v55 = vmul.f32 %v610_v51, %v584_v53  ;;  %v607_v5 = vsel %vm604_vm13, %v606_v4, %v602_v1 }
 0x31e   :  { %v615_v60 = vsub.f32 1.0, %v607_v5  ;;  %v619_v11 = vmul.f32 %v617_v7, %v607_v5 }
 0x31f   :  { %v613_v0 = vadd.f32 %v612_v55, %v1745_v39 }
 0x321   :  { %1323 = vtanh.f32 %v613_v0 }
 0x327   :  { %v1324_v8 = vpop.eup %1323 }
 0x328   :  { %v616_v10 = vmul.f32 %v1324_v8, %v615_v60 }
 0x32a   :  { %v1804_v12 = vadd.f32 %v619_v11, %v616_v10 }
 0x32c   :  { %v622_v13 = vrot.slane %v1804_v12, 4  ;;  %v739_v10 = vrot.slane %v1804_v12, 6 }
 0x32e   :  { %1261 = vmatmul.msk.f32.vlgmr.msra.gmra.mxu1 %vm96_vm1, %v622_v13  ;;  %1262 = vmatmul.msk.f32.vlgmr.msrb.gmra.mxu2 %vm96_vm1, %v622_v13 }
 0x32f   :  { %1263 = vmatmul.msk.f32.vlgmr.msrb.gmra.mxu3 %vm96_vm1, %v622_v13  ;;  %910 = vmatpush.msra.mxu1 %v1643_v43 }
 0x330   :  { %992 = vmatpush.msrb.mxu2 %v1544_v17  ;;  %1012 = vmatpush.msrb.mxu3 %v1615_v38 }
 0x331   :  { %911 = vmatpush.msra.mxu1 %v1648_v44 }
 0x332   :  { %993 = vmatpush.msrb.mxu2 %v1559_v21  ;;  %1013 = vmatpush.msrb.mxu3 %v1622_v40 }
 0x333   :  { %912 = vmatpush.msra.mxu1 %v1660_v45 }
 0x334   :  { %994 = vmatpush.msrb.mxu2 %v1585_v30  ;;  %1014 = vmatpush.msrb.mxu3 %v1628_v41 }
 0x335   :  { %913 = vmatpush.msra.mxu1 %v1665_v46 }
 0x336   :  { %995 = vmatpush.msrb.mxu2 %v1600_v34  ;;  %1015 = vmatpush.msrb.mxu3 %v1636_v42 }
 0x3ab   :  { %v642_v6 = vpop.f32.mrf.mxu1 }
 0x3ac   :  { %v643_v14 = vadd.f32 %v1707_v57, %v642_v6 }
 0x3ae   :  { %v686_v15 = vrot.slane %v643_v14, 2 }
 0x3b0   :  { %v688_v16 = vadd.f32 %v686_v15, %v1724_v2 }
 0x3b1   :  { %v662_v18 = vpop.f32.mrf.mxu2 }
 0x3b2   :  { %v1264_v20 = vmul.f32 -1.442695, %v688_v16  ;;  %v663_v22 = vadd.f32 %v1712_v58, %v662_v18  ;;  %v682_v35 = vpop.f32.mrf.mxu3 }
 0x3b3   :  { %v683_v37 = vadd.f32 %v1736_v19, %v682_v35 }
 0x3b4   :  { %1325 = vpow2.f32 %v1264_v20  ;;  %v709_v23 = vrot.slane %v663_v22, 2 }
 0x3b5   :  { %v732_v54 = vrot.slane %v683_v37, 2 }
 0x3b6   :  { %v711_v24 = vadd.f32 %v709_v23, %v1727_v3 }
 0x3b8   :  { %v1265_v25 = vmul.f32 -1.442695, %v711_v24 }
 0x3ba   :  { %v1326_v26 = vpop.eup %1325  ;;  %1327 = vpow2.f32 %v1265_v25 }
 0x3bb   :  { %v692_v27 = vadd.f32 1.0, %v1326_v26 }
 0x3bd   :  { %1329 = vrcp.f32 %v692_v27  ;;  %v704_v36 = vand.u32 2147483648, %v692_v27  ;;  %v702_v48 = vand.u32 2147483647, %v692_v27  ;;  %vm698_vm15 = vweird.f32 %v692_v27 }
 0x3bf   :  { %v705_v51 = vor.u32 1.1754944e-38, %v704_v36  ;;  %vm703_vm2 = vcmp.eq.f32.partialorder %v702_v48, 8.507059e+37 }
 0x3c0   :  { %v1328_v29 = vpop.eup %1327 }
 0x3c1   :  { %v715_v31 = vadd.f32 1.0, %v1328_v29 }
 0x3c3   :  { %v1330_v32 = vpop.eup %1329  ;;  %1331 = vrcp.f32 %v715_v31  ;;  %v727_v59 = vand.u32 2147483648, %v715_v31  ;;  %v725_v1 = vand.u32 2147483647, %v715_v31  ;;  %vm721_vm4 = vweird.f32 %v715_v31 }
 0x3c4   :  { %v694_v33 = vmul.f32 %v1330_v32, %v692_v27  ;;  %vm699_vm14 = vweird.f32 %v1330_v32 }
 0x3c5   :  { %vm700_vm0 = vmor %vm698_vm15, %vm699_vm14  ;;  %v728_v7 = vor.u32 1.1754944e-38, %v727_v59  ;;  %vm726_vm6 = vcmp.eq.f32.partialorder %v725_v1, 8.507059e+37 }
 0x3c6   :  { %v695_v2 = vsub.f32 1.0, %v694_v33 }
 0x3c8   :  { %v696_v47 = vmul.f32 %v1330_v32, %v695_v2 }
 0x3c9   :  { %v1332_v49 = vpop.eup %1331 }
 0x3ca   :  { %v717_v3 = vmul.f32 %v1332_v49, %v715_v31  ;;  %v697_v50 = vadd.f32 %v1330_v32, %v696_v47  ;;  %vm722_vm3 = vweird.f32 %v1332_v49 }
 0x3cb   :  { %vm723_vm5 = vmor %vm721_vm4, %vm722_vm3 }
 0x3cc   :  { %v718_v52 = vsub.f32 1.0, %v717_v3  ;;  %v701_v53 = vsel %vm700_vm0, %v1330_v32, %v697_v50 }
 0x3cd   :  { %v706_v55 = vsel %vm703_vm2, %v705_v51, %v701_v53 }
 0x3ce   :  { %v719_v56 = vmul.f32 %v1332_v49, %v718_v52  ;;  %v734_v0 = vmul.f32 %v732_v54, %v706_v55 }
 0x3d0   :  { %v720_v4 = vadd.f32 %v1332_v49, %v719_v56  ;;  %v735_v5 = vadd.f32 %v734_v0, %v1745_v39  ;;  %v1851_v39 = vadd.f32 %v1720_v61, %v1770_v63 }
 0x3d2   :  { %v724_v60 = vsel %vm723_vm5, %v1332_v49, %v720_v4  ;;  %1333 = vtanh.f32 %v735_v5  ;;  %v1860_v49 = vadd.f32 %v1741_v28, %v1768_v62 }
 0x3d3   :  { %v729_v8 = vsel %vm726_vm6, %v728_v7, %v724_v60 }
 0x3d4   :  { %v737_v11 = vsub.f32 1.0, %v729_v8  ;;  %v741_v14 = vmul.f32 %v739_v10, %v729_v8 }
 0x3d8   :  { %v1334_v13 = vpop.eup %1333 }
 0x3d9   :  { %v738_v6 = vmul.f32 %v1334_v13, %v737_v11 }
 0x3db   :  { %v742_v15 = vadd.f32 %v741_v14, %v738_v6 }
 0x3dd   :  { %v1829_v16 = vrot.slane %v742_v15, 6 }
 0x3df   :  { %1266 = vmatmul.msk.f32.vlgmr.msra.gmra.mxu0 %vm96_vm1, %v1829_v16  ;;  %1267 = vmatmul.msk.f32.vlgmr.msrb.gmra.mxu1 %vm96_vm1, %v1829_v16 }
 0x3e0   :  { %1268 = vmatmul.msk.f32.vlgmr.msra.gmra.mxu2 %vm96_vm1, %v1829_v16  ;;  %1032 = vmatpush.msra.mxu0 %v1643_v43 }
 0x3e1   :  { %1114 = vmatpush.msrb.mxu1 %v1544_v17  ;;  %1134 = vmatpush.msra.mxu2 %v1615_v38 }
 0x3e2   :  { %1033 = vmatpush.msra.mxu0 %v1648_v44 }
 0x3e3   :  { %1115 = vmatpush.msrb.mxu1 %v1559_v21  ;;  %1135 = vmatpush.msra.mxu2 %v1622_v40 }
 0x3e4   :  { %1034 = vmatpush.msra.mxu0 %v1660_v45 }
 0x3e5   :  { %1116 = vmatpush.msrb.mxu1 %v1585_v30  ;;  %1136 = vmatpush.msra.mxu2 %v1628_v41 }
 0x3e6   :  { %1035 = vmatpush.msra.mxu0 %v1665_v46 }
 0x3e7   :  { %1117 = vmatpush.msrb.mxu1 %v1600_v34  ;;  %1137 = vmatpush.msra.mxu2 %v1636_v42 }
 0x45c   :  { %v764_v17 = vpop.f32.mrf.mxu0  ;;  %v784_v38 = vpop.f32.mrf.mxu1 }
 0x45d   :  { %v765_v21 = vadd.f32 %v1707_v57, %v764_v17  ;;  %v785_v40 = vadd.f32 %v1712_v58, %v784_v38 }
 0x45f   :  { %v807_v30 = vadd.f32 %v765_v21, %v1731_v9  ;;  %v827_v41 = vadd.f32 %v785_v40, %v1851_v39 }
 0x461   :  { %v1269_v12 = vmul.f32 -1.442695, %v807_v30  ;;  %v1270_v18 = vmul.f32 -1.442695, %v827_v41 }
 0x463   :  { %1335 = vpow2.f32 %v1269_v12  ;;  %v804_v33 = vpop.f32.mrf.mxu2 }
 0x464   :  { %1337 = vpow2.f32 %v1270_v18  ;;  %v805_v36 = vadd.f32 %v1736_v19, %v804_v33 }
 0x469   :  { %v1336_v34 = vpop.eup %1335 }
 0x46a   :  { %v1338_v42 = vpop.eup %1337  ;;  %v811_v20 = vadd.f32 1.0, %v1336_v34 }
 0x46b   :  { %v831_v22 = vadd.f32 1.0, %v1338_v42 }
 0x46c   :  { %1339 = vrcp.f32 %v811_v20  ;;  %v823_v27 = vand.u32 2147483648, %v811_v20  ;;  %v821_v31 = vand.u32 2147483647, %v811_v20  ;;  %vm817_vm8 = vweird.f32 %v811_v20 }
 0x46d   :  { %1341 = vrcp.f32 %v831_v22  ;;  %v843_v3 = vand.u32 2147483648, %v831_v22  ;;  %vm837_vm12 = vweird.f32 %v831_v22  ;;  %v841_v51 = vand.u32 2147483647, %v831_v22 }
 0x46e   :  { %v824_v2 = vor.u32 1.1754944e-38, %v823_v27  ;;  %vm822_vm10 = vcmp.eq.f32.partialorder %v821_v31, 8.507059e+37 }
 0x46f   :  { %v844_v54 = vor.u32 1.1754944e-38, %v843_v3  ;;  %vm842_vm14 = vcmp.eq.f32.partialorder %v841_v51, 8.507059e+37 }
 0x472   :  { %v1340_v61 = vpop.eup %1339 }
 0x473   :  { %v1342_v63 = vpop.eup %1341  ;;  %v813_v23 = vmul.f32 %v1340_v61, %v811_v20  ;;  %vm818_vm7 = vweird.f32 %v1340_v61 }
 0x474   :  { %v833_v24 = vmul.f32 %v1342_v63, %v831_v22  ;;  %vm819_vm9 = vmor %vm817_vm8, %vm818_vm7  ;;  %vm838_vm11 = vweird.f32 %v1342_v63 }
 0x475   :  { %v814_v25 = vsub.f32 1.0, %v813_v23  ;;  %vm839_vm13 = vmor %vm837_vm12, %vm838_vm11 }
 0x476   :  { %v834_v26 = vsub.f32 1.0, %v833_v24 }
 0x477   :  { %v815_v29 = vmul.f32 %v1340_v61, %v814_v25 }
 0x478   :  { %v835_v32 = vmul.f32 %v1342_v63, %v834_v26 }
 0x479   :  { %v816_v35 = vadd.f32 %v1340_v61, %v815_v29 }
 0x47a   :  { %v836_v48 = vadd.f32 %v1342_v63, %v835_v32 }
 0x47b   :  { %v820_v37 = vsel %vm819_vm9, %v1340_v61, %v816_v35 }
 0x47c   :  { %v825_v47 = vsel %vm822_vm10, %v824_v2, %v820_v37  ;;  %v840_v53 = vsel %vm839_vm13, %v1342_v63, %v836_v48 }
 0x47d   :  { %v847_v50 = vmul.f32 %v825_v47, %v805_v36  ;;  %v845_v55 = vsel %vm842_vm14, %v844_v54, %v840_v53 }
 0x47e   :  { %v850_v56 = vsub.f32 1.0, %v845_v55  ;;  %v853_v1 = vmul.f32 %v845_v55, %v1829_v16 }
 0x47f   :  { %v848_v52 = vadd.f32 %v847_v50, %v1860_v49 }
 0x481   :  { %1343 = vtanh.f32 %v848_v52 }
 0x487   :  { %v1344_v59 = vpop.eup %1343 }
 0x488   :  { %v851_v0 = vmul.f32 %v1344_v59, %v850_v56 }
 0x48a   :  { %v1864_v4 = vadd.f32 %v853_v1, %v851_v0 }
 0x48c   :  { %1271 = vmatmul.msk.f32.vlgmr.msra.gmra.mxu3 %vm96_vm1, %v1864_v4  ;;  %1272 = vmatmul.msk.f32.vlgmr.msrb.gmra.mxu0 %vm96_vm1, %v1864_v4  ;;  %v972_v35 = vrot.slane %v1864_v4, 6 }
 0x48d   :  { %1273 = vmatmul.msk.f32.vlgmr.msra.gmra.mxu1 %vm96_vm1, %v1864_v4  ;;  %1154 = vmatpush.msra.mxu3 %v1643_v43 }
 0x48f   :  { %1155 = vmatpush.msra.mxu3 %v1648_v44 }
 0x491   :  { %1156 = vmatpush.msra.mxu3 %v1660_v45 }
 0x493   :  { %1157 = vmatpush.msra.mxu3 %v1665_v46 }
 0x509   :  { %v895_v28 = vpop.f32.mrf.mxu0 }
 0x50a   :  { %v896_v62 = vadd.f32 %v1712_v58, %v895_v28  ;;  %v915_v21 = vpop.f32.mrf.mxu1 }
 0x50b   :  { %v916_v41 = vadd.f32 %v1736_v19, %v915_v21 }
 0x50c   :  { %v942_v5 = vrot.slane %v896_v62, 6 }
 0x50d   :  { %v965_v22 = vrot.slane %v916_v41, 6 }
 0x50e   :  { %v944_v7 = vadd.f32 %v942_v5, %v1851_v39 }
 0x50f   :  { %v875_v60 = vpop.f32.mrf.mxu3 }
 0x510   :  { %v1275_v8 = vmul.f32 -1.442695, %v944_v7  ;;  %v876_v10 = vadd.f32 %v1707_v57, %v875_v60 }
 0x512   :  { %1345 = vpow2.f32 %v1275_v8  ;;  %v919_v11 = vrot.slane %v876_v10, 6 }
 0x514   :  { %v921_v43 = vadd.f32 %v919_v11, %v1731_v9 }
 0x516   :  { %v1274_v13 = vmul.f32 -1.442695, %v921_v43 }
 0x518   :  { %v1346_v44 = vpop.eup %1345  ;;  %1347 = vpow2.f32 %v1274_v13 }
 0x519   :  { %v948_v45 = vadd.f32 1.0, %v1346_v44 }
 0x51b   :  { %1349 = vrcp.f32 %v948_v45  ;;  %v960_v24 = vand.u32 2147483648, %v948_v45  ;;  %vm954_vm5 = vweird.f32 %v948_v45  ;;  %v958_v26 = vand.u32 2147483647, %v948_v45 }
 0x51d   :  { %v961_v31 = vor.u32 1.1754944e-38, %v960_v24  ;;  %vm959_vm7 = vcmp.eq.f32.partialorder %v958_v26, 8.507059e+37 }
 0x51e   :  { %v1348_v46 = vpop.eup %1347 }
 0x51f   :  { %v925_v6 = vadd.f32 1.0, %v1348_v46 }
 0x521   :  { %1351 = vrcp.f32 %v925_v6  ;;  %v1350_v14 = vpop.eup %1349  ;;  %v937_v30 = vand.u32 2147483648, %v925_v6  ;;  %v935_v18 = vand.u32 2147483647, %v925_v6  ;;  %vm931_vm0 = vweird.f32 %v925_v6 }
 0x522   :  { %v950_v15 = vmul.f32 %v1350_v14, %v948_v45  ;;  %vm955_vm4 = vweird.f32 %v1350_v14 }
 0x523   :  { %v938_v20 = vor.u32 1.1754944e-38, %v937_v30  ;;  %vm936_vm3 = vcmp.eq.f32.partialorder %v935_v18, 8.507059e+37  ;;  %vm956_vm6 = vmor %vm954_vm5, %vm955_vm4 }
 0x524   :  { %v951_v38 = vsub.f32 1.0, %v950_v15 }
 0x526   :  { %v952_v34 = vmul.f32 %v1350_v14, %v951_v38 }
 0x527   :  { %v1352_v16 = vpop.eup %1351 }
 0x528   :  { %v927_v17 = vmul.f32 %v1352_v16, %v925_v6  ;;  %vm932_vm15 = vweird.f32 %v1352_v16  ;;  %v953_v63 = vadd.f32 %v1350_v14, %v952_v34 }
 0x529   :  { %vm933_vm2 = vmor %vm931_vm0, %vm932_vm15 }
 0x52a   :  { %v928_v40 = vsub.f32 1.0, %v927_v17  ;;  %v957_v29 = vsel %vm956_vm6, %v1350_v14, %v953_v63 }
 0x52b   :  { %v962_v32 = vsel %vm959_vm7, %v961_v31, %v957_v29 }
 0x52c   :  { %v929_v12 = vmul.f32 %v1352_v16, %v928_v40  ;;  %v970_v33 = vsub.f32 1.0, %v962_v32  ;;  %v974_v37 = vmul.f32 %v972_v35, %v962_v32 }
 0x52e   :  { %v930_v42 = vadd.f32 %v1352_v16, %v929_v12 }
 0x530   :  { %v934_v61 = vsel %vm933_vm2, %v1352_v16, %v930_v42 }
 0x531   :  { %v939_v23 = vsel %vm936_vm3, %v938_v20, %v934_v61 }
 0x532   :  { %v967_v25 = vmul.f32 %v965_v22, %v939_v23 }
 0x534   :  { %v968_v27 = vadd.f32 %v967_v25, %v1860_v49 }
 0x536   :  { %1353 = vtanh.f32 %v968_v27 }
 0x53c   :  { %v1354_v2 = vpop.eup %1353 }
 0x53d   :  { %v971_v36 = vmul.f32 %v1354_v2, %v970_v33 }
 0x53f   :  { %v975_v47 = vadd.f32 %v974_v37, %v971_v36 }
 0x541   :  { %v977_v48 = vrot.slane %v975_v47, 2  ;;  %v1094_v20 = vrot.slane %v975_v47, 6 }
 0x543   :  { %1276 = vmatmul.msk.f32.vlgmr.msrb.gmra.mxu2 %vm96_vm1, %v977_v48  ;;  %1277 = vmatmul.msk.f32.vlgmr.msrb.gmra.mxu3 %vm96_vm1, %v977_v48 }
 0x544   :  { %1278 = vmatmul.msk.f32.vlgmr.msra.gmra.mxu0 %vm96_vm1, %v977_v48 }
 0x5c1   :  { %v1037_v8 = vpop.f32.mrf.mxu0 }
 0x5c2   :  { %v1038_v44 = vadd.f32 %v1736_v19, %v1037_v8 }
 0x5c4   :  { %v1087_v16 = vrot.slane %v1038_v44, 4 }
 0x5c6   :  { %v997_v3 = vpop.f32.mrf.mxu2  ;;  %v1017_v50 = vpop.f32.mrf.mxu3 }
 0x5c7   :  { %v998_v51 = vadd.f32 %v1707_v57, %v997_v3  ;;  %v1018_v52 = vadd.f32 %v1712_v58, %v1017_v50 }
 0x5c9   :  { %v1041_v53 = vrot.slane %v998_v51, 4  ;;  %v1064_v54 = vrot.slane %v1018_v52, 4 }
 0x5cb   :  { %v1043_v55 = vadd.f32 %v1041_v53, %v1731_v9  ;;  %v1066_v56 = vadd.f32 %v1064_v54, %v1851_v39 }
 0x5cd   :  { %v1279_v59 = vmul.f32 -1.442695, %v1043_v55  ;;  %v1280_v0 = vmul.f32 -1.442695, %v1066_v56 }
 0x5cf   :  { %1355 = vpow2.f32 %v1279_v59 }
 0x5d0   :  { %1357 = vpow2.f32 %v1280_v0 }
 0x5d5   :  { %v1356_v1 = vpop.eup %1355 }
 0x5d6   :  { %v1358_v4 = vpop.eup %1357  ;;  %v1047_v28 = vadd.f32 1.0, %v1356_v1 }
 0x5d7   :  { %v1070_v62 = vadd.f32 1.0, %v1358_v4 }
 0x5d8   :  { %1359 = vrcp.f32 %v1047_v28  ;;  %v1059_v43 = vand.u32 2147483648, %v1047_v28  ;;  %v1057_v46 = vand.u32 2147483647, %v1047_v28  ;;  %vm1053_vm9 = vweird.f32 %v1047_v28 }
 0x5d9   :  { %1361 = vrcp.f32 %v1070_v62  ;;  %v1082_v30 = vand.u32 2147483648, %v1070_v62  ;;  %vm1076_vm13 = vweird.f32 %v1070_v62  ;;  %v1080_v41 = vand.u32 2147483647, %v1070_v62 }
 0x5da   :  { %v1060_v15 = vor.u32 1.1754944e-38, %v1059_v43  ;;  %vm1058_vm11 = vcmp.eq.f32.partialorder %v1057_v46, 8.507059e+37 }
 0x5db   :  { %v1083_v34 = vor.u32 1.1754944e-38, %v1082_v30  ;;  %vm1081_vm15 = vcmp.eq.f32.partialorder %v1080_v41, 8.507059e+37 }
 0x5de   :  { %v1360_v5 = vpop.eup %1359 }
 0x5df   :  { %v1362_v7 = vpop.eup %1361  ;;  %v1049_v60 = vmul.f32 %v1360_v5, %v1047_v28  ;;  %vm1054_vm8 = vweird.f32 %v1360_v5 }
 0x5e0   :  { %v1072_v10 = vmul.f32 %v1362_v7, %v1070_v62  ;;  %vm1055_vm10 = vmor %vm1053_vm9, %vm1054_vm8  ;;  %vm1077_vm12 = vweird.f32 %v1362_v7  ;;  %vm1221_vm8 = vcmask 261126  }
 0x5e1   :  { %v1050_v11 = vsub.f32 1.0, %v1049_v60  ;;  %vm1078_vm14 = vmor %vm1076_vm13, %vm1077_vm12 }
 0x5e2   :  { %v1073_v13 = vsub.f32 1.0, %v1072_v10 }
 0x5e3   :  { %v1051_v45 = vmul.f32 %v1360_v5, %v1050_v11 }
 0x5e4   :  { %v1074_v6 = vmul.f32 %v1362_v7, %v1073_v13 }
 0x5e5   :  { %v1052_v14 = vadd.f32 %v1360_v5, %v1051_v45 }
 0x5e6   :  { %v1075_v21 = vadd.f32 %v1362_v7, %v1074_v6 }
 0x5e7   :  { %v1056_v17 = vsel %vm1055_vm10, %v1360_v5, %v1052_v14 }
 0x5e8   :  { %v1061_v38 = vsel %vm1058_vm11, %v1060_v15, %v1056_v17  ;;  %v1079_v18 = vsel %vm1078_vm14, %v1362_v7, %v1075_v21 }
 0x5e9   :  { %v1089_v40 = vmul.f32 %v1087_v16, %v1061_v38  ;;  %v1084_v42 = vsel %vm1081_vm15, %v1083_v34, %v1079_v18 }
 0x5ea   :  { %v1092_v22 = vsub.f32 1.0, %v1084_v42  ;;  %v1096_v23 = vmul.f32 %v1094_v20, %v1084_v42 }
 0x5eb   :  { %v1090_v12 = vadd.f32 %v1089_v40, %v1860_v49 }
 0x5ed   :  { %1363 = vtanh.f32 %v1090_v12 }
 0x5f3   :  { %v1364_v61 = vpop.eup %1363 }
 0x5f4   :  { %v1093_v63 = vmul.f32 %v1364_v61, %v1092_v22 }
 0x5f6   :  { %v1097_v24 = vadd.f32 %v1096_v23, %v1093_v63 }
 0x5f8   :  { %v1099_v25 = vrot.slane %v1097_v24, 4  ;;  %v1216_v45 = vrot.slane %v1097_v24, 6 }
 0x5fa   :  { %1281 = vmatmul.msk.f32.vlgmr.msrb.gmra.mxu1 %vm96_vm1, %v1099_v25  ;;  %1282 = vmatmul.msk.f32.vlgmr.msra.gmra.mxu2 %vm96_vm1, %v1099_v25 }
 0x5fb   :  { %1283 = vmatmul.msk.f32.vlgmr.msra.gmra.mxu3 %vm96_vm1, %v1099_v25 }
 0x677   :  { %v1119_v26 = vpop.f32.mrf.mxu1 }
 0x678   :  { %v1120_v27 = vadd.f32 %v1707_v57, %v1119_v26 }
 0x67a   :  { %v1163_v29 = vrot.slane %v1120_v27, 2 }
 0x67c   :  { %v1165_v31 = vadd.f32 %v1163_v29, %v1731_v9 }
 0x67d   :  { %v1139_v32 = vpop.f32.mrf.mxu2 }
 0x67e   :  { %v1284_v33 = vmul.f32 -1.442695, %v1165_v31  ;;  %v1140_v35 = vadd.f32 %v1712_v58, %v1139_v32  ;;  %v1159_v52 = vpop.f32.mrf.mxu3 }
 0x67f   :  { %v1160_v54 = vadd.f32 %v1736_v19, %v1159_v52 }
 0x680   :  { %1365 = vpow2.f32 %v1284_v33  ;;  %v1186_v2 = vrot.slane %v1140_v35, 2 }
 0x681   :  { %v1209_v28 = vrot.slane %v1160_v54, 2 }
 0x682   :  { %v1188_v36 = vadd.f32 %v1186_v2, %v1851_v39 }
 0x684   :  { %v1285_v37 = vmul.f32 -1.442695, %v1188_v36 }
 0x686   :  { %v1366_v47 = vpop.eup %1365  ;;  %1367 = vpow2.f32 %v1285_v37 }
 0x687   :  { %v1169_v48 = vadd.f32 1.0, %v1366_v47 }
 0x689   :  { %1369 = vrcp.f32 %v1169_v48  ;;  %v1181_v53 = vand.u32 2147483648, %v1169_v48  ;;  %v1179_v55 = vand.u32 2147483647, %v1169_v48  ;;  %vm1175_vm0 = vweird.f32 %v1169_v48 }
 0x68b   :  { %v1182_v0 = vor.u32 1.1754944e-38, %v1181_v53  ;;  %vm1180_vm3 = vcmp.eq.f32.partialorder %v1179_v55, 8.507059e+37 }
 0x68c   :  { %v1368_v3 = vpop.eup %1367 }
 0x68d   :  { %v1192_v50 = vadd.f32 1.0, %v1368_v3 }
 0x68f   :  { %v1370_v51 = vpop.eup %1369  ;;  %1371 = vrcp.f32 %v1192_v50  ;;  %v1204_v7 = vand.u32 2147483648, %v1192_v50  ;;  %v1202_v8 = vand.u32 2147483647, %v1192_v50  ;;  %vm1198_vm5 = vweird.f32 %v1192_v50 }
 0x690   :  { %v1171_v57 = vmul.f32 %v1370_v51, %v1169_v48  ;;  %vm1176_vm1 = vweird.f32 %v1370_v51 }
 0x691   :  { %vm1177_vm2 = vmor %vm1175_vm0, %vm1176_vm1  ;;  %v1205_v11 = vor.u32 1.1754944e-38, %v1204_v7  ;;  %vm1203_vm7 = vcmp.eq.f32.partialorder %v1202_v8, 8.507059e+37 }
 0x692   :  { %v1172_v9 = vsub.f32 1.0, %v1171_v57 }
 0x694   :  { %v1173_v58 = vmul.f32 %v1370_v51, %v1172_v9 }
 0x695   :  { %v1372_v56 = vpop.eup %1371 }
 0x696   :  { %v1194_v39 = vmul.f32 %v1372_v56, %v1192_v50  ;;  %v1174_v59 = vadd.f32 %v1370_v51, %v1173_v58  ;;  %vm1199_vm4 = vweird.f32 %v1372_v56 }
 0x697   :  { %vm1200_vm6 = vmor %vm1198_vm5, %vm1199_vm4 }
 0x698   :  { %v1195_v1 = vsub.f32 1.0, %v1194_v39  ;;  %v1178_v4 = vsel %vm1177_vm2, %v1370_v51, %v1174_v59 }
 0x699   :  { %v1183_v62 = vsel %vm1180_vm3, %v1182_v0, %v1178_v4 }
 0x69a   :  { %v1196_v5 = vmul.f32 %v1372_v56, %v1195_v1  ;;  %v1211_v60 = vmul.f32 %v1209_v28, %v1183_v62 }
 0x69c   :  { %v1197_v19 = vadd.f32 %v1372_v56, %v1196_v5  ;;  %v1212_v10 = vadd.f32 %v1211_v60, %v1860_v49 }
 0x69e   :  { %v1201_v43 = vsel %vm1200_vm6, %v1372_v56, %v1197_v19  ;;  %1373 = vtanh.f32 %v1212_v10 }
 0x69f   :  { %v1206_v13 = vsel %vm1203_vm7, %v1205_v11, %v1201_v43 }
 0x6a0   :  { %v1214_v44 = vsub.f32 1.0, %v1206_v13  ;;  %v1218_v14 = vmul.f32 %v1216_v45, %v1206_v13 }
 0x6a4   :  { %v1374_v46 = vpop.eup %1373 }
 0x6a5   :  { %v1215_v6 = vmul.f32 %v1374_v46, %v1214_v44 }
 0x6a7   :  { %v1219_v15 = vadd.f32 %v1218_v14, %v1215_v6 }
 0x6a9   :  { %1375 = vtanh.f32 %v1219_v15 }
 0x6af   :  { %v1376_v49 = vpop.eup %1375 }
 0x6b0   :  { %1222 = vst.msk [vmem:[#allocation2 - $0x6] sm:$0xc0] %vm1221_vm8, %v1376_v49 }
 0x6b1   :  { %1233 = dma.vmem_to_hbm [thread:$0]  %s1229_s15, 32, %s1231_s6, [#allocation3]  }
 0x6b2   :  { %1401 = dma.done.wait [#allocation3], 32  }
 0x6b3   :  { %1402 = vsyncadd [#allocation3], 4294967264 }
 0x6b4   :  { %1238 = vsyncpa [#allocation3], 1 }

</bundles_post_ra>
